<compile_context>
chip_gen: v5e
topology: v5e:2x2
jax: 0.10.0
libtpu: 0.0.40
codegen_flags: <defaults>
</compile_context>

<pallas_src>
import math
import functools

import jax
import jax.numpy as jnp
import numpy as np
from jax import lax
from jax.experimental import pallas as pl
from jax.experimental.pallas import tpu as pltpu


def _cross_att_kernel(x_ref, ctx_ref, mask_ref,
                      wq_ref, bq_ref, wkv_ref, bkv_ref,
                      wo_ref, bo_ref, gamma_ref, beta_ref,
                      out_ref, kh_ref, vh_ref,
                      *, num_heads, head_dim):
    nh, hd = num_heads, head_dim
    tq = x_ref.shape[1]
    sk = ctx_ref.shape[1]
    all_head = nh * hd

    # ---- K/V projection: once per batch (Sq axis is "arbitrary") ----
    @pl.when(pl.program_id(1) == 0)
    def _():
        ctx_bf = ctx_ref[0].astype(jnp.bfloat16)                       # (Sk, Hm)
        kv = jnp.dot(ctx_bf, wkv_ref[...],
                     preferred_element_type=jnp.float32) + bkv_ref[...]  # (Sk, 2*Ht)
        k = kv[:, :all_head]
        v = kv[:, all_head:]
        # split heads -> (nh, Sk, hd), stored bf16 for the batched MXU matmuls
        kh_ref[...] = k.reshape(sk, nh, hd).transpose(1, 0, 2).astype(jnp.bfloat16)
        vh_ref[...] = v.reshape(sk, nh, hd).transpose(1, 0, 2).astype(jnp.bfloat16)

    # ---- Q projection (Wq/bq are pre-scaled by 1/sqrt(hd)) ----
    x = x_ref[0]                                   # (Tq, Ht) f32, also residual
    x_bf = x.astype(jnp.bfloat16)
    q = jnp.dot(x_bf, wq_ref[...],
                preferred_element_type=jnp.float32) + bq_ref[...]       # (Tq, Ht)
    qh = q.reshape(tq, nh, hd).transpose(1, 0, 2).astype(jnp.bfloat16)  # (nh, Tq, hd)

    # ---- scores = (Q/sqrt(d)) K^T + mask, batched over heads ----
    scores = lax.dot_general(qh, kh_ref[...], (((2,), (2,)), ((0,), (0,))),
                             preferred_element_type=jnp.float32)        # (nh, Tq, Sk)
    scores = scores + mask_ref[0][None, :, :]

    # f32 softmax; divide replaced by EUP reciprocal.
    # TODO(synk): for very long Sk (>~1-2K on v7x) tile Sk with an online
    # (flash-style) softmax instead of materializing (nh, Tq, Sk) in VMEM.
    scores = scores - jnp.max(scores, axis=-1, keepdims=True)
    probs = jnp.exp(scores)
    probs = probs * pl.reciprocal(jnp.sum(probs, axis=-1, keepdims=True),
                                  approx=True)
    # attention_probs dropout -> identity (eval mode)

    # ---- context = P @ V, batched over heads ----
    ctx_heads = lax.dot_general(probs.astype(jnp.bfloat16), vh_ref[...],
                                (((2,), (1,)), ((0,), (0,))),
                                preferred_element_type=jnp.float32)      # (nh, Tq, hd)
    # TODO(synk): the transpose+reshape relayout could be removed by contracting
    # the head dim directly with a (nh, hd, Ht) Wo via multi-contraction
    # dot_general if/when Mosaic lowers it cleanly.
    attn = ctx_heads.transpose(1, 0, 2).reshape(tq, all_head)            # (Tq, Ht)

    # ---- BertAttOutput: dense -> (dropout=identity) -> residual -> LayerNorm ----
    hs = jnp.dot(attn.astype(jnp.bfloat16), wo_ref[...],
                 preferred_element_type=jnp.float32) + bo_ref[...]
    hs = hs + x

    mean = jnp.mean(hs, axis=-1, keepdims=True)
    cen = hs - mean
    var = jnp.mean(cen * cen, axis=-1, keepdims=True)
    normed = cen * lax.rsqrt(var + 1e-12)
    out_ref[0] = (normed * gamma_ref[...] + beta_ref[...]).astype(out_ref.dtype)


def prepare_crossatt_params(params, *, num_heads):
    """One-time host-side prep: bf16 weights, fused K|V, 1/sqrt(d) folded into Q."""
    Ht = params["wq"].shape[1]
    hd = Ht // num_heads
    scale = 1.0 / math.sqrt(hd)
    return {
        "wq": (params["wq"] * scale).astype(jnp.bfloat16),
        "bq": (params["bq"] * scale).astype(jnp.float32),
        "wkv": jnp.concatenate([params["wk"], params["wv"]], axis=1).astype(jnp.bfloat16),
        "bkv": jnp.concatenate([params["bk"], params["bv"]], axis=1).astype(jnp.float32),
        "wo": params["wo"].astype(jnp.bfloat16),
        "bo": params["bo"].astype(jnp.float32),
        "gamma": params["gamma"].astype(jnp.float32),
        "beta": params["beta"].astype(jnp.float32),
    }


def _pick_tq(Sq):
    if Sq <= 256:
        return Sq                      # single tile, block = full dim
    if Sq % 256 == 0:
        return 256                     # fills 256-wide MXU (v6e/v7x)
    return 128                         # pad the tail to a multiple of 128


def _vmem_limit_bytes(tq, Sk, Ht, Hm, nh, hd):
    bf, f4 = 2, 4
    weights = 2 * (2 * Ht * Ht * bf + Hm * 2 * Ht * bf)          # dbl-buffered bf16 Wq/Wo/Wkv
    io = 2 * (2 * tq * Ht * f4 + Sk * Hm * f4 + Sk * f4)         # x/out/ctx/mask tiles
    scratch = 2 * nh * Sk * hd * bf                              # kh/vh
    interm = (tq * Ht * f4 + Sk * 2 * Ht * f4                    # q, kv
              + 3 * nh * tq * Sk * f4                            # scores/probs (+bf16 copy)
              + nh * tq * hd * f4 + 2 * tq * Ht * f4)            # ctx_heads, hs, normed
    est = weights + io + scratch + interm
    # floor at the 32 MiB default, cap below v7x's 64 MiB physical VMEM
    return int(min(max(32 * 2**20, 2 * est), 56 * 2**20))


def bert_crossatt_layer(x, ctx, attn_mask, prepared, *, num_heads):
    """x: (B, Sq, Ht) f32, ctx: (B, Sk, Hm) f32, attn_mask: (B, 1, Sk) additive f32.
    `prepared` comes from prepare_crossatt_params (bf16/fused weights)."""
    B, Sq, Ht = x.shape
    _, Sk, Hm = ctx.shape
    assert Ht % num_heads == 0
    nh = num_heads
    hd = Ht // nh

    tq = _pick_tq(Sq)
    pad_q = (-Sq) % tq
    if pad_q:
        x_in = jnp.pad(x, ((0, 0), (0, pad_q), (0, 0)))
    else:
        x_in = x
    Sq_pad = Sq + pad_q
    n_sq = Sq_pad // tq

    kernel = functools.partial(_cross_att_kernel, num_heads=nh, head_dim=hd)

    def const2d(shape):
        # grid-invariant parameter block (weights / biases / LN params)
        return pl.BlockSpec(shape, lambda b, s: (0, 0))

    out = pl.pallas_call(
        kernel,
        out_shape=jax.ShapeDtypeStruct((B, Sq_pad, Ht), x.dtype),
        grid=(B, n_sq),
        in_specs=[
            pl.BlockSpec((1, tq, Ht), lambda b, s: (b, s, 0)),   # x (query / residual)
            pl.BlockSpec((1, Sk, Hm), lambda b, s: (b, 0, 0)),   # ctx (key/value source)
            pl.BlockSpec((1, 1, Sk), lambda b, s: (b, 0, 0)),    # additive mask
            const2d((Ht, Ht)),        # Wq (bf16, pre-scaled by 1/sqrt(hd))
            const2d((1, Ht)),         # bq (pre-scaled)
            const2d((Hm, 2 * Ht)),    # Wk|Wv fused (bf16)
            const2d((1, 2 * Ht)),     # bk|bv fused
            const2d((Ht, Ht)),        # Wo (bf16)
            const2d((1, Ht)),         # bo
            const2d((1, Ht)),         # LayerNorm gamma
            const2d((1, Ht)),         # LayerNorm beta
        ],
        out_specs=pl.BlockSpec((1, tq, Ht), lambda b, s: (b, s, 0)),
        scratch_shapes=[
            pltpu.VMEM((nh, Sk, hd), jnp.bfloat16),   # K heads, reused across Sq tiles
            pltpu.VMEM((nh, Sk, hd), jnp.bfloat16),   # V heads, reused across Sq tiles
        ],
        compiler_params=pltpu.CompilerParams(
            dimension_semantics=("parallel", "arbitrary"),
            vmem_limit_bytes=_vmem_limit_bytes(tq, Sk, Ht, Hm, nh, hd)),
    )(x_in, ctx, attn_mask,
      prepared["wq"], prepared["bq"], prepared["wkv"], prepared["bkv"],
      prepared["wo"], prepared["bo"], prepared["gamma"], prepared["beta"])

    if pad_q:
        out = out[:, :Sq, :]
    return out


def _reference(x, ctx, attn_mask, params, *, num_heads):
    """Pure-JAX f32 reference mirroring the PyTorch module (eval mode)."""
    B, Sq, Ht = x.shape
    _, Sk, Hm = ctx.shape
    hd = Ht // num_heads

    q = x @ params["wq"] + params["bq"][0]
    k = ctx @ params["wk"] + params["bk"][0]
    v = ctx @ params["wv"] + params["bv"][0]

    def split(t, S):
        return t.reshape(B, S, num_heads, hd).transpose(0, 2, 1, 3)

    qh, kh, vh = split(q, Sq), split(k, Sk), split(v, Sk)
    scores = jnp.einsum("bhqd,bhkd->bhqk", qh, kh) / math.sqrt(hd)
    scores = scores + attn_mask[:, None, :, :]
    probs = jax.nn.softmax(scores, axis=-1)
    ctx_layer = jnp.einsum("bhqk,bhkd->bhqd", probs, vh)
    ctx_layer = ctx_layer.transpose(0, 2, 1, 3).reshape(B, Sq, Ht)

    hs = ctx_layer @ params["wo"] + params["bo"][0]
    hs = hs + x
    mean = jnp.mean(hs, axis=-1, keepdims=True)
    var = jnp.mean(jnp.square(hs - mean), axis=-1, keepdims=True)
    return (hs - mean) / jnp.sqrt(var + 1e-12) * params["gamma"][0] + params["beta"][0]


if __name__ == "__main__":
    # Small, forward-consistent shapes.
    B, Sq, Sk = 2, 8, 16
    TEXT_HIDDEN, MOL_HIDDEN = 32, 48
    NUM_HEADS = 4          # TEXT_HIDDEN % NUM_HEADS == 0

    key = jax.random.PRNGKey(0)
    ks = jax.random.split(key, 12)

    def init(k, shape, scale=0.02):
        return (scale * jax.random.normal(k, shape)).astype(jnp.float32)

    params = {
        "wq": init(ks[0], (TEXT_HIDDEN, TEXT_HIDDEN)),
        "bq": init(ks[1], (1, TEXT_HIDDEN)),
        "wk": init(ks[2], (MOL_HIDDEN, TEXT_HIDDEN)),
        "bk": init(ks[3], (1, TEXT_HIDDEN)),
        "wv": init(ks[4], (MOL_HIDDEN, TEXT_HIDDEN)),
        "bv": init(ks[5], (1, TEXT_HIDDEN)),
        "wo": init(ks[6], (TEXT_HIDDEN, TEXT_HIDDEN)),
        "bo": init(ks[7], (1, TEXT_HIDDEN)),
        "gamma": jnp.ones((1, TEXT_HIDDEN), jnp.float32),
        "beta": jnp.zeros((1, TEXT_HIDDEN), jnp.float32),
    }

    x = jax.random.normal(ks[8], (B, Sq, TEXT_HIDDEN), jnp.float32)
    ctx = jax.random.normal(ks[9], (B, Sk, MOL_HIDDEN), jnp.float32)

    # BERT-style additive attention mask: 1 = attend, 0 = masked -> -10000.
    keep = (jax.random.uniform(ks[10], (B, Sk)) > 0.2).astype(jnp.float32)
    attn_mask = ((1.0 - keep) * -10000.0)[:, None, :]     # (B, 1, Sk)

    # One-time parameter prep (bf16 cast, K|V fusion, 1/sqrt(d) fold).
    prepared = prepare_crossatt_params(params, num_heads=NUM_HEADS)

    out = bert_crossatt_layer(x, ctx, attn_mask, prepared, num_heads=NUM_HEADS)
    out = jax.block_until_ready(out)

    ref = _reference(x, ctx, attn_mask, params, num_heads=NUM_HEADS)
    # bf16 matmuls (f32 accumulation) + approx reciprocal -> looser tolerance vs f32 ref.
    np.testing.assert_allclose(np.asarray(out), np.asarray(ref),
                               rtol=2e-2, atol=2e-2)
    print("KERNEL_OK")
</pallas_src>

<mosaic_0001>
module attributes {stable_mosaic.version = 11 : i64} {
  func.func @_cross_att_kernel(%arg0: i32, %arg1: i32, %arg2: memref<1x8x32xf32, #tpu.memory_space<vmem>>, %arg3: memref<1x16x48xf32, #tpu.memory_space<vmem>>, %arg4: memref<1x1x16xf32, #tpu.memory_space<vmem>>, %arg5: memref<32x32xbf16, #tpu.memory_space<vmem>>, %arg6: memref<1x32xf32, #tpu.memory_space<vmem>>, %arg7: memref<48x64xbf16, #tpu.memory_space<vmem>>, %arg8: memref<1x64xf32, #tpu.memory_space<vmem>>, %arg9: memref<32x32xbf16, #tpu.memory_space<vmem>>, %arg10: memref<1x32xf32, #tpu.memory_space<vmem>>, %arg11: memref<1x32xf32, #tpu.memory_space<vmem>>, %arg12: memref<1x32xf32, #tpu.memory_space<vmem>>, %arg13: memref<1x8x32xf32, #tpu.memory_space<vmem>>, %arg14: memref<4x16x8xbf16, #tpu.memory_space<vmem>>, %arg15: memref<4x16x8xbf16, #tpu.memory_space<vmem>>) attributes {dimension_semantics = [#tpu.dimension_semantics<parallel>, #tpu.dimension_semantics<arbitrary>], iteration_bounds = array<i64: 2, 1>, scalar_prefetch = 0 : i64, scratch_operands = 2 : i64, tpu.core_type = #tpu.core_type<tc>, window_params = [{transform_indices = @transform_0, window_bounds = array<i64: 1, 8, 32>}, {transform_indices = @transform_1, window_bounds = array<i64: 1, 16, 48>}, {transform_indices = @transform_2, window_bounds = array<i64: 1, 1, 16>}, {pipeline_mode = #tpu.pipeline_mode<synchronous>, transform_indices = @transform_3, window_bounds = array<i64: 32, 32>}, {pipeline_mode = #tpu.pipeline_mode<synchronous>, transform_indices = @transform_4, window_bounds = array<i64: 1, 32>}, {pipeline_mode = #tpu.pipeline_mode<synchronous>, transform_indices = @transform_5, window_bounds = array<i64: 48, 64>}, {pipeline_mode = #tpu.pipeline_mode<synchronous>, transform_indices = @transform_6, window_bounds = array<i64: 1, 64>}, {pipeline_mode = #tpu.pipeline_mode<synchronous>, transform_indices = @transform_7, window_bounds = array<i64: 32, 32>}, {pipeline_mode = #tpu.pipeline_mode<synchronous>, transform_indices = @transform_8, window_bounds = array<i64: 1, 32>}, {pipeline_mode = #tpu.pipeline_mode<synchronous>, transform_indices = @transform_9, window_bounds = array<i64: 1, 32>}, {pipeline_mode = #tpu.pipeline_mode<synchronous>, transform_indices = @transform_10, window_bounds = array<i64: 1, 32>}, {transform_indices = @transform_11, window_bounds = array<i64: 1, 8, 32>}]} {
    %c0_i32 = arith.constant 0 : i32
    %0 = arith.cmpi eq, %arg1, %c0_i32 : i32
    %1 = arith.extui %0 : i1 to i32
    %c0_i32_0 = arith.constant 0 : i32
    %2 = arith.cmpi ne, %1, %c0_i32_0 : i32
    scf.if %2 {
      %c0_37 = arith.constant 0 : index
      %c0_38 = arith.constant 0 : index
      %c0_39 = arith.constant 0 : index
      %68 = vector.load %arg3[%c0_37, %c0_38, %c0_39] : memref<1x16x48xf32, #tpu.memory_space<vmem>>, vector<1x16x48xf32>
      %69 = vector.shape_cast %68 : vector<1x16x48xf32> to vector<16x48xf32>
      %70 = arith.truncf %69 : vector<16x48xf32> to vector<16x48xbf16>
      %c0_40 = arith.constant 0 : index
      %c0_41 = arith.constant 0 : index
      %71 = vector.load %arg7[%c0_40, %c0_41] : memref<48x64xbf16, #tpu.memory_space<vmem>>, vector<48x64xbf16>
      %cst_42 = arith.constant dense<0.000000e+00> : vector<16x64xf32>
      %72 = tpu.matmul %70, %71, %cst_42 {dimension_numbers = #tpu.dot_dimension_numbers<[1], [0], [0], [1], [0, 0, 1, 1], [], []>} : vector<16x48xbf16>, vector<48x64xbf16>, vector<16x64xf32> -> vector<16x64xf32>
      %c0_43 = arith.constant 0 : index
      %c0_44 = arith.constant 0 : index
      %73 = vector.load %arg8[%c0_43, %c0_44] : memref<1x64xf32, #tpu.memory_space<vmem>>, vector<1x64xf32>
      %74 = vector.broadcast %73 : vector<1x64xf32> to vector<16x64xf32>
      %75 = arith.addf %72, %74 : vector<16x64xf32>
      %76 = vector.extract_strided_slice %75 {offsets = [0, 0], sizes = [16, 32], strides = [1, 1]} : vector<16x64xf32> to vector<16x32xf32>
      %77 = vector.extract_strided_slice %75 {offsets = [0, 32], sizes = [16, 32], strides = [1, 1]} : vector<16x64xf32> to vector<16x32xf32>
      %78 = vector.shape_cast %76 : vector<16x32xf32> to vector<16x4x8xf32>
      %79 = tpu.transpose %78, [1, 0, 2] : vector<16x4x8xf32> -> vector<4x16x8xf32>
      %80 = arith.truncf %79 : vector<4x16x8xf32> to vector<4x16x8xbf16>
      %c0_45 = arith.constant 0 : index
      %c0_46 = arith.constant 0 : index
      %c0_47 = arith.constant 0 : index
      %81 = vector.load %arg14[%c0_45, %c0_46, %c0_47] : memref<4x16x8xbf16, #tpu.memory_space<vmem>>, vector<4x16x8xbf16>
      tpu.vector_store %arg14[%c0_45, %c0_46, %c0_47], %80 {strides = array<i32>} : memref<4x16x8xbf16, #tpu.memory_space<vmem>>, vector<4x16x8xbf16>,
      %82 = vector.shape_cast %77 : vector<16x32xf32> to vector<16x4x8xf32>
      %83 = tpu.transpose %82, [1, 0, 2] : vector<16x4x8xf32> -> vector<4x16x8xf32>
      %84 = arith.truncf %83 : vector<4x16x8xf32> to vector<4x16x8xbf16>
      %c0_48 = arith.constant 0 : index
      %c0_49 = arith.constant 0 : index
      %c0_50 = arith.constant 0 : index
      %85 = vector.load %arg15[%c0_48, %c0_49, %c0_50] : memref<4x16x8xbf16, #tpu.memory_space<vmem>>, vector<4x16x8xbf16>
      tpu.vector_store %arg15[%c0_48, %c0_49, %c0_50], %84 {strides = array<i32>} : memref<4x16x8xbf16, #tpu.memory_space<vmem>>, vector<4x16x8xbf16>,
    } else {
    }
    %c0 = arith.constant 0 : index
    %c0_1 = arith.constant 0 : index
    %c0_2 = arith.constant 0 : index
    %3 = vector.load %arg2[%c0, %c0_1, %c0_2] : memref<1x8x32xf32, #tpu.memory_space<vmem>>, vector<1x8x32xf32>
    %4 = vector.shape_cast %3 : vector<1x8x32xf32> to vector<8x32xf32>
    %5 = arith.truncf %4 : vector<8x32xf32> to vector<8x32xbf16>
    %c0_3 = arith.constant 0 : index
    %c0_4 = arith.constant 0 : index
    %6 = vector.load %arg5[%c0_3, %c0_4] : memref<32x32xbf16, #tpu.memory_space<vmem>>, vector<32x32xbf16>
    %cst = arith.constant dense<0.000000e+00> : vector<8x32xf32>
    %7 = tpu.matmul %5, %6, %cst {dimension_numbers = #tpu.dot_dimension_numbers<[1], [0], [0], [1], [0, 0, 1, 1], [], []>} : vector<8x32xbf16>, vector<32x32xbf16>, vector<8x32xf32> -> vector<8x32xf32>
    %c0_5 = arith.constant 0 : index
    %c0_6 = arith.constant 0 : index
    %8 = vector.load %arg6[%c0_5, %c0_6] : memref<1x32xf32, #tpu.memory_space<vmem>>, vector<1x32xf32>
    %9 = vector.broadcast %8 : vector<1x32xf32> to vector<8x32xf32>
    %10 = arith.addf %7, %9 : vector<8x32xf32>
    %11 = vector.shape_cast %10 : vector<8x32xf32> to vector<8x4x8xf32>
    %12 = tpu.transpose %11, [1, 0, 2] : vector<8x4x8xf32> -> vector<4x8x8xf32>
    %13 = arith.truncf %12 : vector<4x8x8xf32> to vector<4x8x8xbf16>
    %c0_7 = arith.constant 0 : index
    %c0_8 = arith.constant 0 : index
    %c0_9 = arith.constant 0 : index
    %14 = vector.load %arg14[%c0_7, %c0_8, %c0_9] : memref<4x16x8xbf16, #tpu.memory_space<vmem>>, vector<4x16x8xbf16>
    %cst_10 = arith.constant dense<0.000000e+00> : vector<4x8x16xf32>
    %15 = tpu.matmul %13, %14, %cst_10 {dimension_numbers = #tpu.dot_dimension_numbers<[2], [2], [1], [1], [0, 0, 0, 1, 1, 1], [0], [0]>} : vector<4x8x8xbf16>, vector<4x16x8xbf16>, vector<4x8x16xf32> -> vector<4x8x16xf32>
    %c0_11 = arith.constant 0 : index
    %c0_12 = arith.constant 0 : index
    %c0_13 = arith.constant 0 : index
    %16 = vector.load %arg4[%c0_11, %c0_12, %c0_13] : memref<1x1x16xf32, #tpu.memory_space<vmem>>, vector<1x1x16xf32>
    %17 = vector.shape_cast %16 : vector<1x1x16xf32> to vector<1x16xf32>
    %18 = vector.shape_cast %17 : vector<1x16xf32> to vector<1x1x16xf32>
    %19 = vector.broadcast %18 : vector<1x1x16xf32> to vector<4x8x16xf32>
    %20 = arith.addf %15, %19 : vector<4x8x16xf32>
    %cst_14 = arith.constant dense<0xFF800000> : vector<4x8xf32>
    %21 = vector.multi_reduction <maximumf>, %20, %cst_14 [2] : vector<4x8x16xf32> to vector<4x8xf32>
    %22 = vector.shape_cast %21 : vector<4x8xf32> to vector<4x8x1xf32>
    %23 = vector.broadcast %22 : vector<4x8x1xf32> to vector<4x8x16xf32>
    %24 = arith.subf %20, %23 : vector<4x8x16xf32>
    %25 = math.exp %24 : vector<4x8x16xf32>
    %cst_15 = arith.constant dense<0.000000e+00> : vector<4x8xf32>
    %26 = vector.multi_reduction <add>, %25, %cst_15 [2] : vector<4x8x16xf32> to vector<4x8xf32>
    %27 = vector.shape_cast %26 : vector<4x8xf32> to vector<4x8x1xf32>
    %28 = tpu.reciprocal %27 {approx = true} : vector<4x8x1xf32> -> vector<4x8x1xf32>
    %29 = vector.broadcast %28 : vector<4x8x1xf32> to vector<4x8x16xf32>
    %30 = arith.mulf %25, %29 : vector<4x8x16xf32>
    %31 = arith.truncf %30 : vector<4x8x16xf32> to vector<4x8x16xbf16>
    %c0_16 = arith.constant 0 : index
    %c0_17 = arith.constant 0 : index
    %c0_18 = arith.constant 0 : index
    %32 = vector.load %arg15[%c0_16, %c0_17, %c0_18] : memref<4x16x8xbf16, #tpu.memory_space<vmem>>, vector<4x16x8xbf16>
    %cst_19 = arith.constant dense<0.000000e+00> : vector<4x8x8xf32>
    %33 = tpu.matmul %31, %32, %cst_19 {dimension_numbers = #tpu.dot_dimension_numbers<[2], [1], [1], [2], [0, 0, 0, 1, 1, 2], [0], [0]>} : vector<4x8x16xbf16>, vector<4x16x8xbf16>, vector<4x8x8xf32> -> vector<4x8x8xf32>
    %34 = tpu.transpose %33, [1, 0, 2] : vector<4x8x8xf32> -> vector<8x4x8xf32>
    %35 = vector.shape_cast %34 : vector<8x4x8xf32> to vector<8x32xf32>
    %36 = arith.truncf %35 : vector<8x32xf32> to vector<8x32xbf16>
    %c0_20 = arith.constant 0 : index
    %c0_21 = arith.constant 0 : index
    %37 = vector.load %arg9[%c0_20, %c0_21] : memref<32x32xbf16, #tpu.memory_space<vmem>>, vector<32x32xbf16>
    %cst_22 = arith.constant dense<0.000000e+00> : vector<8x32xf32>
    %38 = tpu.matmul %36, %37, %cst_22 {dimension_numbers = #tpu.dot_dimension_numbers<[1], [0], [0], [1], [0, 0, 1, 1], [], []>} : vector<8x32xbf16>, vector<32x32xbf16>, vector<8x32xf32> -> vector<8x32xf32>
    %c0_23 = arith.constant 0 : index
    %c0_24 = arith.constant 0 : index
    %39 = vector.load %arg10[%c0_23, %c0_24] : memref<1x32xf32, #tpu.memory_space<vmem>>, vector<1x32xf32>
    %40 = vector.broadcast %39 : vector<1x32xf32> to vector<8x32xf32>
    %41 = arith.addf %38, %40 : vector<8x32xf32>
    %42 = arith.addf %41, %4 : vector<8x32xf32>
    %cst_25 = arith.constant dense<0.000000e+00> : vector<8xf32>
    %43 = vector.multi_reduction <add>, %42, %cst_25 [1] : vector<8x32xf32> to vector<8xf32>
    %44 = vector.shape_cast %43 : vector<8xf32> to vector<8x1xf32>
    %cst_26 = arith.constant 3.200000e+01 : f32
    %45 = vector.broadcast %cst_26 : f32 to vector<8x1xf32>
    %46 = arith.divf %44, %45 : vector<8x1xf32>
    %47 = vector.broadcast %46 : vector<8x1xf32> to vector<8x32xf32>
    %48 = arith.subf %42, %47 : vector<8x32xf32>
    %49 = arith.mulf %48, %48 : vector<8x32xf32>
    %cst_27 = arith.constant dense<0.000000e+00> : vector<8xf32>
    %50 = vector.multi_reduction <add>, %49, %cst_27 [1] : vector<8x32xf32> to vector<8xf32>
    %51 = vector.shape_cast %50 : vector<8xf32> to vector<8x1xf32>
    %cst_28 = arith.constant 3.200000e+01 : f32
    %52 = vector.broadcast %cst_28 : f32 to vector<8x1xf32>
    %53 = arith.divf %51, %52 : vector<8x1xf32>
    %cst_29 = arith.constant 9.99999996E-13 : f32
    %54 = vector.broadcast %cst_29 : f32 to vector<8x1xf32>
    %55 = arith.addf %53, %54 : vector<8x1xf32>
    %56 = math.rsqrt %55 : vector<8x1xf32>
    %57 = vector.broadcast %56 : vector<8x1xf32> to vector<8x32xf32>
    %58 = arith.mulf %48, %57 : vector<8x32xf32>
    %c0_30 = arith.constant 0 : index
    %c0_31 = arith.constant 0 : index
    %59 = vector.load %arg11[%c0_30, %c0_31] : memref<1x32xf32, #tpu.memory_space<vmem>>, vector<1x32xf32>
    %60 = vector.broadcast %59 : vector<1x32xf32> to vector<8x32xf32>
    %61 = arith.mulf %58, %60 : vector<8x32xf32>
    %c0_32 = arith.constant 0 : index
    %c0_33 = arith.constant 0 : index
    %62 = vector.load %arg12[%c0_32, %c0_33] : memref<1x32xf32, #tpu.memory_space<vmem>>, vector<1x32xf32>
    %63 = vector.broadcast %62 : vector<1x32xf32> to vector<8x32xf32>
    %64 = arith.addf %61, %63 : vector<8x32xf32>
    %c0_34 = arith.constant 0 : index
    %c0_35 = arith.constant 0 : index
    %c0_36 = arith.constant 0 : index
    %65 = vector.load %arg13[%c0_34, %c0_35, %c0_36] : memref<1x8x32xf32, #tpu.memory_space<vmem>>, vector<1x8x32xf32>
    %66 = vector.shape_cast %65 : vector<1x8x32xf32> to vector<8x32xf32>
    %67 = vector.shape_cast %64 : vector<8x32xf32> to vector<1x8x32xf32>
    tpu.vector_store %arg13[%c0_34, %c0_35, %c0_36], %67 {strides = array<i32>} : memref<1x8x32xf32, #tpu.memory_space<vmem>>, vector<1x8x32xf32>,
    return
  }
  func.func @transform_0(%arg0: i32, %arg1: i32) -> (i32, i32, i32) {
    %c0_i32 = arith.constant 0 : i32
    %c0_i32_0 = arith.constant 0 : i32
    return %arg0, %arg1, %c0_i32 : i32, i32, i32
  }
  func.func @transform_1(%arg0: i32, %arg1: i32) -> (i32, i32, i32) {
    %c0_i32 = arith.constant 0 : i32
    %c0_i32_0 = arith.constant 0 : i32
    %c0_i32_1 = arith.constant 0 : i32
    return %arg0, %c0_i32, %c0_i32_0 : i32, i32, i32
  }
  func.func @transform_2(%arg0: i32, %arg1: i32) -> (i32, i32, i32) {
    %c0_i32 = arith.constant 0 : i32
    %c0_i32_0 = arith.constant 0 : i32
    %c0_i32_1 = arith.constant 0 : i32
    return %arg0, %c0_i32, %c0_i32_0 : i32, i32, i32
  }
  func.func @transform_3(%arg0: i32, %arg1: i32) -> (i32, i32) {
    %c0_i32 = arith.constant 0 : i32
    %c0_i32_0 = arith.constant 0 : i32
    %c0_i32_1 = arith.constant 0 : i32
    return %c0_i32, %c0_i32_0 : i32, i32
  }
  func.func @transform_4(%arg0: i32, %arg1: i32) -> (i32, i32) {
    %c0_i32 = arith.constant 0 : i32
    %c0_i32_0 = arith.constant 0 : i32
    %c0_i32_1 = arith.constant 0 : i32
    return %c0_i32, %c0_i32_0 : i32, i32
  }
  func.func @transform_5(%arg0: i32, %arg1: i32) -> (i32, i32) {
    %c0_i32 = arith.constant 0 : i32
    %c0_i32_0 = arith.constant 0 : i32
    %c0_i32_1 = arith.constant 0 : i32
    return %c0_i32, %c0_i32_0 : i32, i32
  }
  func.func @transform_6(%arg0: i32, %arg1: i32) -> (i32, i32) {
    %c0_i32 = arith.constant 0 : i32
    %c0_i32_0 = arith.constant 0 : i32
    %c0_i32_1 = arith.constant 0 : i32
    return %c0_i32, %c0_i32_0 : i32, i32
  }
  func.func @transform_7(%arg0: i32, %arg1: i32) -> (i32, i32) {
    %c0_i32 = arith.constant 0 : i32
    %c0_i32_0 = arith.constant 0 : i32
    %c0_i32_1 = arith.constant 0 : i32
    return %c0_i32, %c0_i32_0 : i32, i32
  }
  func.func @transform_8(%arg0: i32, %arg1: i32) -> (i32, i32) {
    %c0_i32 = arith.constant 0 : i32
    %c0_i32_0 = arith.constant 0 : i32
    %c0_i32_1 = arith.constant 0 : i32
    return %c0_i32, %c0_i32_0 : i32, i32
  }
  func.func @transform_9(%arg0: i32, %arg1: i32) -> (i32, i32) {
    %c0_i32 = arith.constant 0 : i32
    %c0_i32_0 = arith.constant 0 : i32
    %c0_i32_1 = arith.constant 0 : i32
    return %c0_i32, %c0_i32_0 : i32, i32
  }
  func.func @transform_10(%arg0: i32, %arg1: i32) -> (i32, i32) {
    %c0_i32 = arith.constant 0 : i32
    %c0_i32_0 = arith.constant 0 : i32
    %c0_i32_1 = arith.constant 0 : i32
    return %c0_i32, %c0_i32_0 : i32, i32
  }
  func.func @transform_11(%arg0: i32, %arg1: i32) -> (i32, i32, i32) {
    %c0_i32 = arith.constant 0 : i32
    %c0_i32_0 = arith.constant 0 : i32
    return %arg0, %arg1, %c0_i32 : i32, i32, i32
  }
}

</mosaic_0001>

<bundles_post_ra>
// kernel: tpu_custom_call.1
= control target key start
LH: loop header
LB: loop body
LE: loop exit
PB: predicated region body
PF: predicated region fallthrough
CT: control target
= control target key end

     0   :  { %s3138_s0 = inlined_call_operand.hbm [shape: f32[2,8,32], index: 0, kind: input, shape index: {}]   ;;  %s3139_s1 = inlined_call_operand.hbm [shape: f32[2,16,48], index: 1, kind: input, shape index: {}]   ;;  %s3140_s2 = inlined_call_operand.hbm [shape: f32[2,1,16], index: 2, kind: input, shape index: {}]   ;;  %s3141_s3 = inlined_call_operand.hbm [shape: bf16[32,32], index: 3, kind: input, shape index: {}]   ;;  %s3142_s4 = inlined_call_operand.vmem [shape: f32[1,32], index: 4, kind: input, shape index: {}]   ;;  %s3143_s5 = inlined_call_operand.hbm [shape: bf16[48,64], index: 5, kind: input, shape index: {}]   ;;  %s3144_s6 = inlined_call_operand.vmem [shape: f32[1,64], index: 6, kind: input, shape index: {}]   ;;  %s3145_s7 = inlined_call_operand.hbm [shape: bf16[32,32], index: 7, kind: input, shape index: {}]   ;;  %s3146_s8 = inlined_call_operand.vmem [shape: f32[1,32], index: 8, kind: input, shape index: {}]   ;;  %s3147_s9 = inlined_call_operand.vmem [shape: f32[1,32], index: 9, kind: input, shape index: {}]   ;;  %s3148_s10 = inlined_call_operand.vmem [shape: f32[1,32], index: 10, kind: input, shape index: {}]   ;;  %s3149_s11 = inlined_call_operand.hbm [shape: f32[2,8,32], index: 11, kind: output, shape index: {}]  }
   0x1   :  { %3163 = sst [smem:[#allocation28_spill]] %s3139_s1 }
   0x2   :  { %3164 = sst [smem:[#allocation29_spill]] %s3141_s3 }
   0x3   :  { %3165 = sst [smem:[#allocation30_spill]] %s3143_s5 }
   0x4   :  { %3166 = sst [smem:[#allocation31_spill]] %s3147_s9 }
   0x5   :  { %3167 = sst [smem:[#allocation32_spill]] %s3148_s10 }
   0x6   :  { %3168 = sst [smem:[#allocation33_spill]] %s3149_s11 }
   0x7   :  { %16 = vsyncpa [#allocation5], 0 }
   0x8   :  { %18 = vsyncpa [#allocation5 + $0x1], 0 }
   0x9   :  { %19 = vsyncpa [#allocation8], 0 }
   0xa   :  { %21 = vsyncpa [#allocation8 + $0x1], 0 }
   0xb   :  { %22 = vsyncpa [#allocation11], 0 }
   0xc   :  { %23 = vsyncpa [#allocation14], 0 }
   0xd   :  { %24 = vsyncpa [#allocation6], 0 }
   0xe   :  { %26 = vsyncpa [#allocation6 + $0x1], 0  ;;  %s2546_s17 = smov 0   ;;  %s2548_s18 = smov 0  }
   0xf   :  { %s2550_s19 = smov 0   ;;  %s2552_s20 = smov 0  }
  0x10   :  { %s2554_s21 = smov 0   ;;  %s2556_s22 = smov 0  }
  0x11 LB: > { %3169 = sst [smem:[#allocation21_spill]] %s2447_s17  ;;  %s2577_s23 = sadd.s32 4294967295, %s2467_s22   ;;  %s2467_s22 = sphi %s2556_s22, %s32_s22   ;;  %s2463_s21 = sphi %s2554_s21, %s3201_s21   ;;  %s2459_s20 = sphi %s2552_s20, %s3200_s20   ;;  %s2455_s19 = sphi %s2550_s19, %s3196_s19   ;;  %s2451_s18 = sphi %s2548_s18, %s3199_s18   ;;  %s2447_s17 = sphi %s2546_s17, %s3198_s17  }
  0x12   : > { %3170 = sst [smem:[#allocation22_spill]] %s2455_s19  ;;  %s1905_s24 = sadd.s32 4294967294, %s2467_s22  }
  0x13   : > { %3171 = sst [smem:[#allocation23_spill]] %s2467_s22  ;;  %p66_p0 = scmp.ne.s32.totalorder %s2451_s18, %s2447_s17 }
  0x14   : > { %p67_p1 = scmp.eq.s32.totalorder %s2577_s23, 0  ;;  %p312_p2 = scmp.eq.s32.totalorder %s2577_s23, 1 }
  0x15   : > { %p318_p3 = scmp.eq.s32.totalorder %s1905_s24, 1  ;;  %p1906_p5 = scmp.ge.s32.totalorder %s2467_s22, 1 }
  0x16   : > { %p2586_p4 = por %p67_p1, %p66_p0  ;;  %p325_p7 = scmp.lt.s32.totalorder %s2467_s22, 3 }
  0x17   : > { %p2591_p6 = por %p318_p3, %p66_p0  ;;  %s3175_s3 = sld [smem:[#allocation29_spill]] }
  0x18   : > { %p2599_p8 = pnand %p1906_p5, %p325_p7  ;;  %s2469_s12 = smov [#allocation10]  }
  0x19   : > { %s3173_s26 = scalar_select %p2591_p6, 1, 0 }
  0x1a   : > { %p2034_p9 = pneg %p2599_p8  ;;  %s338_s13 = sshll.u32 %s2469_s12, 4  ;;  %s339_s13 = int_to_ptr.vmem [resolvable:$true] %s338_s13 }
  0x1b   : > { %3174 = sst [smem:[#allocation24_spill]] %s3173_s26  ;;  %s3150_s15 = smov 64  }
  0x1c   : > { %p2607_p10 = pnand %p2034_p9, %p67_p1  ;;  %s3152_s16 = smov 4  }
  0x1d   : > { %s336_s29 = sshll.u32 %s3175_s3, 4  ;;  %s44_s24 = sadd.s32 1, %s2463_s21  ;;  %s337_s29 = int_to_ptr.hbm [resolvable:$true] %s336_s29 }
  0x1e   : > { %2037 = dma.hbm_to_vmem [thread:$0]  (!%p2607_p10), %s337_s29, 256, %s339_s13, [#allocation11], %s3150_s15, %s3150_s15, %s3152_s16  }
  0x1f   : > { %p46_p12 = scmp.ge.s32.totalorder %s44_s24, 2  ;;  %s53_s27 = sadd.s32 1, %s2455_s19 }
  0x20   : > { %p60_p13 = scmp.ne.s32.totalorder %s2455_s19, %s2451_s18  ;;  %p61_p0 = scmp.eq.s32.totalorder %s2467_s22, 0 }
  0x21   : > { %s3203_s24 = smov (%p46_p12, %s44_s24), 0  ;;  %p2061_p7 = scmp.lt.s32.totalorder %s2467_s22, 2 }
  0x22   : > { %3178 = sst [smem:[#allocation25_spill]] %s3203_s24  ;;  %p62_p3 = por %p61_p0, %p60_p13 }
  0x23   : > { %p2626_p5 = por %p312_p2, %p60_p13  ;;  %s48_s12 = ssub.s32 %s2463_s21, %s3203_s24 }
  0x24   : > { %p51_p9 = scmp.eq.s32.totalorder %s48_s12, 0  ;;  %s2634_s3 = sand.u32 1, %s2455_s19  }
  0x25   : > { %s3179_s28 = scalar_select %p2626_p5, 1, 0 }
  0x26   : > { %p2636_p11 = pnand %p2061_p7, %p62_p3  ;;  %s415_s13 = sand.u32 1, %s2467_s22  }
  0x27   : > { %3180 = sst [smem:[#allocation26_spill]] %s3179_s28  ;;  %s1913_s16 = sshll.u32 %s2634_s3, 4 }
  0x28   : > { %s2642_s15 = scalar_select %p51_p9, %s2455_s19, %s53_s27  }
  0x29   : > { %s1998_s26 = sshll.u32 %s2463_s21, 4  ;;  %s3183_s1 = sld [smem:[#allocation28_spill]] }
  0x2a   : > { %3182 = sst [smem:[#allocation27_spill]] %s2642_s15  ;;  %s419_s12 = scalar_lea.vmem [#allocation7], %s1913_s16 }
  0x2b   : > { %s427_s11 = sshll.u32 %s419_s12, 4  ;;  %s2649_s9 = scalar_lea.sflag [#allocation8], %s415_s13  ;;  %s428_s11 = int_to_ptr.vmem [resolvable:$true] %s427_s11 }
  0x2c   : > { %s2472_s22 = smov 128   ;;  %s2473_s27 = smov 8  }
  0x2d   : > { %s3184_s5 = sld [smem:[#allocation30_spill]]  ;;  %s2474_s17 = smov [#allocation12]  }
  0x2e   : > { %s370_s13 = sshll.u32 %s3145_s7, 4  ;;  %s3185_s12 = smov 4   ;;  %s371_s13 = int_to_ptr.hbm [resolvable:$true] %s370_s13 }
  0x2f   : > { %s424_s28 = scalar_lea.hbm %s3183_s1, %s1998_s26  ;;  %s355_s26 = sshll.u32 %s2474_s17, 4  ;;  %s356_s26 = int_to_ptr.vmem [resolvable:$true] %s355_s26 }
  0x30   : > { %s425_s24 = sshll.u32 %s424_s28, 4  ;;  %s3186_s1 = smov 64   ;;  %s426_s24 = int_to_ptr.hbm [resolvable:$true] %s425_s24 }
  0x31   : > { %2050 = dma.hbm_to_vmem [thread:$0]  (!%p2636_p11), %s426_s24, 256, %s428_s11, %s2649_s9, %s2472_s22, %s2472_s22, %s2473_s27  }
  0x32   : > { %s2475_s11 = smov [#allocation13]   ;;  %s1911_s22 = sshll.u32 %s2634_s3, 3 }
  0x33   : > { %s353_s10 = sshll.u32 %s3184_s5, 4  ;;  %s372_s19 = sshll.u32 %s2475_s11, 4  ;;  %s354_s10 = int_to_ptr.hbm [resolvable:$true] %s353_s10  ;;  %s373_s19 = int_to_ptr.vmem [resolvable:$true] %s372_s19 }
  0x34   : > { %2040 = dma.hbm_to_vmem [thread:$0]  (!%p2607_p10), %s354_s10, 384, %s356_s26, [#allocation11], %s3186_s1, %s3186_s1, %s3185_s12  }
  0x35   : > { %2043 = dma.hbm_to_vmem [thread:$0]  (!%p2607_p10), %s371_s13, 256, %s373_s19, [#allocation14], %s3186_s1, %s3186_s1, %s3185_s12  }
  0x36   : > { %s1912_s15 = sshll.u32 %s2463_s21, 3  ;;  %s399_s10 = scalar_lea.vmem [#allocation4], %s1911_s22 }
  0x37   : > { %s404_s17 = scalar_lea.hbm %s3138_s0, %s1912_s15  ;;  %s408_s26 = sshll.u32 %s399_s10, 4  ;;  %s409_s26 = int_to_ptr.vmem [resolvable:$true] %s408_s26 }
  0x38   : > { %s406_s16 = sshll.u32 %s404_s17, 4  ;;  %s396_s28 = scalar_lea.sflag [#allocation5], %s2634_s3  ;;  %s407_s16 = int_to_ptr.hbm [resolvable:$true] %s406_s16 }
  0x39   : > { %2047 = dma.hbm_to_vmem [thread:$0]  (!%p2636_p11), %s407_s16, 128, %s409_s26, %s396_s28  }
  0x3a   : > { %s443_s5 = scalar_lea.hbm %s3140_s2, %s2463_s21  ;;  %s440_s1 = scalar_lea.vmem [#allocation9], %s2634_s3 }
  0x3b   : > { %s447_s13 = sshll.u32 %s440_s1, 4  ;;  %s445_s12 = sshll.u32 %s443_s5, 4  ;;  %s448_s13 = int_to_ptr.vmem [resolvable:$true] %s447_s13  ;;  %s446_s12 = int_to_ptr.hbm [resolvable:$true] %s445_s12 }
  0x3c   : > { %2053 = dma.hbm_to_vmem [thread:$0]  (!%p2636_p11), %s446_s12, 16, %s448_s13, %s2649_s9  }
  0x3d   : > { %456 = sbr.rel (%p2599_p8) target bundleno = 1493 (0x5d5), region = 64  ;;  %s2689_s19 = sand.u32 (!%p2599_p8), 1, %s2451_s18  }
  0x3e   : > { %s1917_s22 = sshll.u32 (!%p2599_p8), %s2689_s19, 3  ;;  %s459_s15 = scalar_lea.sflag (!%p2599_p8), [#allocation5], %s2689_s19 }
  0x3f   : > { %s2695_s3 = scalar_lea.vmem (!%p2599_p8), [#allocation4], %s1917_s22 }
  0x42   : > { %2426 = dma.done.wait (%p2586_p4), %s459_s15, 128  }
  0x43   : > { %2428 = vsyncadd (%p2586_p4), %s459_s15, 4294967168  ;;  %s468_s5 = sand.u32 1, %s2577_s23   ;;  %s1918_s9 = sshll.u32 %s2689_s19, 4 }
  0x44   : > { %s469_s30 = scalar_lea.sflag [#allocation8], %s468_s5  ;;  %s472_s29 = scalar_lea.vmem [#allocation7], %s1918_s9 }
  0x45   : > { %2430 = dma.done.wait (%p2586_p4), %s469_s30, 272  }
  0x46   : > { %2432 = vsyncadd (%p2586_p4), %s469_s30, 4294967024  ;;  %s481_s24 = scalar_lea.vmem [#allocation9], %s2689_s19 }
  0x47   : > { %2434 = dma.done.wait (%p67_p1), [#allocation11], 640  }
  0x48   : > { %2436 = vsyncadd (%p67_p1), [#allocation11], 4294966656 }
  0x49   : > { %2438 = dma.done.wait (%p67_p1), [#allocation14], 256  }
  0x4a   : > { %2440 = vsyncadd (%p67_p1), [#allocation14], 4294967040  ;;  %v2001_v0 = vld [vmem:[#allocation12 + $0x10] sm:$0xff]  ;;  %v2003_v1 = vld [vmem:[#allocation10 + $0x8] sm:$0xff]  ;;  %vm1139_vm0 = vcmask 261120   ;;  %vm581_vm1 = vcmask 392192  }
  0x4b   : > { %v2000_v2 = vld [vmem:[#allocation12 + $0x8] sm:$0xff]  ;;  %590 = vmatpush.bf16.msra.mxu0 %v2001_v0  ;;  %1149 = vmatpush.bf16.msra.mxu1 %v2003_v1  ;;  %v2002_v3 = vld [vmem:[#allocation10] sm:$0xff]  ;;  %v1999_v6 = vld [vmem:[#allocation12] sm:$0xff]  ;;  %s2476_s27 = smov 112   ;;  %s2477_s26 = smov 104   ;;  %vm620_vm2 = vcmask 1047556  }
  0x4c   : > { %v1117_v4 = vld [vmem:[%s2695_s3] sm:$0xff]  ;;  %v550_v7 = vld [vmem:[%s472_s29] sm:$0xff]  ;;  %s2478_s16 = smov 120   ;;  %s2479_s28 = smov 96   ;;  %v2480_v21 = vmov 1983009808  }
  0x4d   : > { %v1118_v5 = vpack.c.bf16 %v1117_v4, %v1117_v4  ;;  %v551_v8 = vld [vmem:[%s472_s29 + $0x8] sm:$0xff]  ;;  %v2166_v10 = vld [vmem:[%s3142_s4] ss:$0 sm:$0xff]  ;;  %v625_v22 = vunpack.c.l.s4 %v2480_v21  ;;  %v2481_v41 = vmov 1934713408   ;;  %vm848_vm3 = vcmask 60416  }
  0x4e   : > { %v552_v9 = vpack.c.bf16 %v551_v8, %v550_v7  ;;  %v2167_v15 = vld [vmem:[%s3144_s6] ss:$0 sm:$0xff]  ;;  %v649_v42 = vunpack.c.l.s4 %v2481_v41  ;;  %vm1298_vm4 = vcmask 64512   ;;  %vm1390_vm5 = vcmask 130048   ;;  %s2482_s14 = smov 16   ;;  %s2483_s11 = smov 24  }
  0x4f   : > { %591 = vmatpush.bf16.msra.mxu0 %v2000_v2  ;;  %1150 = vmatpush.bf16.msra.mxu1 %v2002_v3  ;;  %v2731_v25 = vunpack.c.0.s8 %v625_v22  ;;  %s2484_s1 = smov 8   ;;  %vm1659_vm6 = vcmask 195584   ;;  %s1995_s15 = sshll.u32 %s2459_s20, 3 }
  0x50   : > { %v2754_v53 = vunpack.c.0.s8 %v649_v42  ;;  %s3187_s9 = sld [smem:[#allocation31_spill]]  ;;  %s544_s20 = scalar_lea.vmem [#allocation15], %s1917_s22 }
  0x51   : > { %s3190_s10 = sld [smem:[#allocation32_spill]] }
  0x52   : > { %1944 = vmatmul.msk.bf16.vlgmr.msra.gmra.mxu1 %vm1139_vm0, %v1118_v5 }
  0x53   : > { %592 = vmatpush.bf16.msra.mxu0 %v1999_v6 }
  0x56   : > { %1935 = vmatmul.msk.bf16.vlgmr.msra.gmra.mxu0 %vm581_vm1, %v552_v9 }
  0xcf   : > { %v1152_v11 = vpop.f32.mrf.mxu1 }
  0xd0   : > { %v1153_v12 = vadd.f32 %v2166_v10, %v1152_v11 }
  0xd2   : > { %1160 = vrot.lane.b32.xlu2 %v1153_v12, %s2476_s27  ;;  %v1169_v24 = vrot.slane %v1153_v12, 4 }
  0xd3   : > { %v594_v13 = vpop.f32.mrf.mxu0 }
  0xd4   : > { %v2724_v17 = vadd.f32 %v2167_v15, %v594_v13 }
  0xd6   : > { %v622_v45 = vrot.slane %v2724_v17, 4 }
  0xd7   : > { %v1154_v14 = vpop.f32.mrf.mxu1 }
  0xda   : > { %1163 = vrot.lane.b32.xlu2 %v1153_v12, %s2477_s26 }
  0xdb   : > { %v596_v16 = vpop.f32.mrf.mxu0 }
  0xdc   : > { %v2726_v18 = vadd.f32 %v2167_v15, %v596_v16 }
  0xde   : > { %v2141_v19 = vpack.i.bf16 %v2726_v18, %v2724_v17  ;;  %v678_v44 = vrot.slane %v2726_v18, 4 }
  0xe0   : > { %2142 = vrot.lane.b32.xlu1 %v2141_v19, %s2477_s26  ;;  %2132 = vrot.lane.b32.xlu0 %v2141_v19, %s2478_s16  ;;  %s1753_s26 = sshll.u32 %s544_s20, 4  ;;  %s1754_s26 = int_to_ptr.vmem [resolvable:$true] %s1753_s26 }
  0xe8   : > { %1157 = vrot.lane.b32.xlu1 %v1153_v12, %s2478_s16  ;;  %2137 = vrot.lane.b32.xlu0 %v2141_v19, %s2476_s27 }
  0xf0   : > { %2147 = vrot.lane.b32.xlu0 %v2141_v19, %s2479_s28 }
 0x12c   : > { %v1161_v20 = vpop.permute.xlu2 %1160 }
 0x12d   : > { %v1166_v23 = vrot.slane %v1161_v20, 4  ;;  %v1170_v27 = vsel %vm620_vm2, %v1161_v20, %v1169_v24 }
 0x12e   : > { %v1178_v34 = vperm.slane %v1170_v27, %v2731_v25 }
 0x12f   : > { %v1168_v26 = vsel %vm620_vm2, %v1166_v23, %v1153_v12 }
 0x130   : > { %v1174_v38 = vperm.slane %v1168_v26, %v2731_v25  ;;  %v1205_v46 = vrot.slane %v1178_v34, 4 }
 0x132   : > { %v1193_v50 = vrot.slane %v1174_v38, 4 }
 0x134   : > { %v1164_v40 = vpop.permute.xlu2 %1163 }
 0x135   : > { %v1179_v49 = vrot.slane %v1164_v40, 4 }
 0x152   : > { %v2735_v28 = vpop.permute.xlu1 %2142  ;;  %v2737_v29 = vpop.permute.xlu0 %2132 }
 0x153   : > { %v2145_v30 = vunpack.i.h.bf16 %v2735_v28  ;;  %v2144_v31 = vunpack.i.l.bf16 %v2735_v28  ;;  %v2135_v32 = vunpack.i.h.bf16 %v2737_v29  ;;  %v2134_v33 = vunpack.i.l.bf16 %v2737_v29 }
 0x155   : > { %v688_v35 = vrot.slane %v2145_v30, 4  ;;  %v632_v36 = vrot.slane %v2144_v31, 4  ;;  %v690_v37 = vrot.slane %v2135_v32, 4  ;;  %v634_v39 = vrot.slane %v2134_v33, 4 }
 0x157   : > { %v689_v43 = vsel %vm620_vm2, %v688_v35, %v2135_v32  ;;  %v691_v47 = vsel %vm620_vm2, %v2145_v30, %v690_v37  ;;  %v633_v48 = vsel %vm620_vm2, %v632_v36, %v2134_v33  ;;  %v635_v52 = vsel %vm620_vm2, %v2144_v31, %v634_v39 }
 0x158   : > { %v2751_v51 = vperm.slane %v689_v43, %v2731_v25  ;;  %v2762_v60 = vperm.slane %v691_v47, %v2731_v25  ;;  %v639_v61 = vperm.slane %v633_v48, %v2731_v25  ;;  %v643_v63 = vperm.slane %v635_v52, %v2731_v25 }
 0x15a   : > { %v1158_v54 = vpop.permute.xlu1 %1157  ;;  %v2756_v55 = vpop.permute.xlu0 %2137  ;;  %v700_v3 = vrot.slane %v2751_v51, 4  ;;  %v644_v20 = vrot.slane %v639_v61, 4  ;;  %v656_v39 = vrot.slane %v643_v63, 4 }
 0x15b   : > { %v1180_v56 = vsel %vm620_vm2, %v1179_v49, %v1158_v54  ;;  %v1181_v57 = vrot.slane %v1158_v54, 4  ;;  %v2140_v58 = vunpack.i.h.bf16 %v2756_v55  ;;  %v2139_v59 = vunpack.i.l.bf16 %v2756_v55 }
 0x15c   : > { %v1186_v62 = vperm.slane %v1180_v56, %v2731_v25 }
 0x15d   : > { %v1182_v0 = vsel %vm620_vm2, %v1164_v40, %v1181_v57  ;;  %v676_v1 = vrot.slane %v2140_v58, 4  ;;  %v619_v2 = vrot.slane %v2139_v59, 4  ;;  %v679_v9 = vsel %vm620_vm2, %v2140_v58, %v678_v44 }
 0x15e   : > { %v1190_v4 = vperm.slane %v1182_v0, %v2731_v25  ;;  %v1191_v5 = vrot.slane %v1186_v62, 4  ;;  %v1194_v6 = vsel %vm620_vm2, %v1186_v62, %v1193_v50 }
 0x15f   : > { %v1202_v7 = vperm.slane %v1194_v6, %v2754_v53  ;;  %v677_v8 = vsel %vm620_vm2, %v676_v1, %v2726_v18  ;;  %v621_v10 = vsel %vm620_vm2, %v619_v2, %v2724_v17  ;;  %v623_v18 = vsel %vm620_vm2, %v2139_v59, %v622_v45 }
 0x160   : > { %v1192_v11 = vsel %vm620_vm2, %v1191_v5, %v1174_v38  ;;  %v1203_v12 = vrot.slane %v1190_v4, 4  ;;  %v1206_v13 = vsel %vm620_vm2, %v1190_v4, %v1205_v46  ;;  %v683_v14 = vperm.slane %v677_v8, %v2731_v25 }
 0x161   : > { %v2781_v15 = vperm.slane %v1192_v11, %v2754_v53  ;;  %v1214_v16 = vperm.slane %v1206_v13, %v2754_v53  ;;  %v2784_v19 = vrot.slane %v1202_v7, 4  ;;  %v687_v17 = vperm.slane %v679_v9, %v2731_v25 }
 0x162   : > { %v1204_v21 = vsel %vm620_vm2, %v1203_v12, %v1178_v34  ;;  %v627_v22 = vperm.slane %v621_v10, %v2731_v25  ;;  %v702_v31 = vrot.slane %v683_v14, 4  ;;  %v631_v32 = vperm.slane %v623_v18, %v2731_v25 }
 0x163   : > { %v1210_v23 = vperm.slane %v1204_v21, %v2754_v53  ;;  %v1215_v24 = vrot.slane %v2781_v15, 4  ;;  %v1218_v26 = vsel %vm620_vm2, 0.0, %v2784_v19  ;;  %v1221_v27 = vrot.slane %v1214_v16, 4 }
 0x164   : > { %v1228_v30 = vrot.slane %v1218_v26, 4  ;;  %v646_v33 = vrot.slane %v627_v22, 4  ;;  %v645_v37 = vsel %vm620_vm2, %v644_v20, %v627_v22  ;;  %v712_v38 = vrot.slane %v2762_v60, 4 }
 0x165   : > { %v1216_v35 = vsel %vm620_vm2, 0.0, %v1215_v24  ;;  %v1219_v34 = vrot.slane %v1210_v23, 4  ;;  %v2797_v36 = vsel %vm620_vm2, 0.0, %v1221_v27  ;;  %v2807_v43 = vsel %vm620_vm2, %v1221_v27, %v1210_v23 }
 0x166   : > { %v1229_v40 = vsel %vm620_vm2, %v1228_v30, %v1216_v35  ;;  %v647_v41 = vsel %vm620_vm2, %v639_v61, %v646_v33  ;;  %v1239_v44 = vrot.slane %v2797_v36, 4  ;;  %v714_v45 = vrot.slane %v687_v17, 4 }
 0x167   : > { %v2804_v42 = vsel %vm620_vm2, 0.0, %v1219_v34  ;;  %v2811_v46 = vperm.slane %v1229_v40, %v2731_v25  ;;  %v651_v47 = vperm.slane %v645_v37, %v2754_v53  ;;  %v655_v48 = vperm.slane %v647_v41, %v2754_v53 }
 0x168   : > { %v657_v49 = vsel %vm620_vm2, %v656_v39, %v631_v32  ;;  %v658_v50 = vrot.slane %v631_v32, 4  ;;  %v701_v54 = vsel %vm620_vm2, %v700_v3, %v683_v14  ;;  %v703_v56 = vsel %vm620_vm2, %v2751_v51, %v702_v31 }
 0x169   : > { %v663_v52 = vperm.slane %v657_v49, %v2754_v53  ;;  %v668_v57 = vrot.slane %v651_v47, 4  ;;  %v670_v58 = vrot.slane %v655_v48, 4  ;;  %v707_v59 = vperm.slane %v701_v54, %v2754_v53 }
 0x16a   : > { %v711_v61 = vperm.slane %v703_v56, %v2754_v53  ;;  %v659_v62 = vsel %vm620_vm2, %v643_v63, %v658_v50  ;;  %v713_v1 = vsel %vm620_vm2, %v712_v38, %v687_v17  ;;  %v715_v2 = vsel %vm620_vm2, %v2762_v60, %v714_v45 }
 0x16b   : > { %v672_v0 = vrot.slane %v663_v52, 4  ;;  %v667_v4 = vperm.slane %v659_v62, %v2754_v53  ;;  %v669_v3 = vsel %vm620_vm2, 0.0, %v668_v57  ;;  %v671_v51 = vsel %vm620_vm2, 0.0, %v670_v58 }
 0x16c   : > { %v719_v5 = vperm.slane %v713_v1, %v2754_v53  ;;  %v723_v7 = vperm.slane %v715_v2, %v2754_v53  ;;  %v724_v8 = vrot.slane %v707_v59, 4  ;;  %v726_v63 = vrot.slane %v711_v61, 4 }
 0x16d   : > { %v673_v6 = vsel %vm620_vm2, 0.0, %v672_v0  ;;  %v674_v9 = vrot.slane %v667_v4, 4  ;;  %v732_v11 = vsel %vm620_vm2, %v670_v58, %v651_v47  ;;  %v737_v12 = vrot.slane %v671_v51, 4 }
 0x16e   : > { %v728_v10 = vrot.slane %v719_v5, 4  ;;  %v725_v60 = vsel %vm620_vm2, 0.0, %v724_v8  ;;  %v727_v13 = vsel %vm620_vm2, 0.0, %v726_v63  ;;  %v730_v14 = vrot.slane %v723_v7, 4 }
 0x16f   : > { %v736_v16 = vperm.slane %v732_v11, %v2731_v25  ;;  %v675_v18 = vsel %vm620_vm2, 0.0, %v674_v9  ;;  %v738_v21 = vsel %vm620_vm2, %v737_v12, %v669_v3  ;;  %v743_v17 = vsel %vm620_vm2, %v674_v9, %v663_v52 }
 0x170   : > { %v729_v20 = vsel %vm620_vm2, 0.0, %v728_v10  ;;  %v731_v22 = vsel %vm620_vm2, 0.0, %v730_v14  ;;  %v742_v23 = vperm.slane %v738_v21, %v2731_v25  ;;  %v747_v24 = vperm.slane %v743_v17, %v2731_v25 }
 0x171   : > { %v748_v26 = vrot.slane %v675_v18, 4  ;;  %v756_v27 = vrot.slane %v736_v16, 4  ;;  %v786_v30 = vsel %vm620_vm2, %v726_v63, %v707_v59  ;;  %v791_v31 = vrot.slane %v727_v13, 4 }
 0x172   : > { %v797_v32 = vsel %vm620_vm2, %v730_v14, %v719_v5  ;;  %v754_v35 = vrot.slane %v742_v23, 4  ;;  %v768_v34 = vrot.slane %v747_v24, 4  ;;  %v790_v37 = vperm.slane %v786_v30, %v2731_v25 }
 0x173   : > { %v749_v33 = vsel %vm620_vm2, %v748_v26, %v673_v6  ;;  %v757_v39 = vsel %vm620_vm2, %v742_v23, %v756_v27  ;;  %v792_v40 = vsel %vm620_vm2, %v791_v31, %v725_v60  ;;  %v801_v41 = vperm.slane %v797_v32, %v2731_v25 }
 0x174   : > { %v753_v38 = vperm.slane %v749_v33, %v2731_v25  ;;  %v755_v45 = vsel %vm620_vm2, %v754_v35, %v736_v16  ;;  %v765_v47 = vperm.slane %v757_v39, %v2754_v53  ;;  %v796_v48 = vperm.slane %v792_v40, %v2731_v25 }
 0x175   : > { %v802_v49 = vrot.slane %v731_v22, 4  ;;  %v761_v50 = vperm.slane %v755_v45, %v2754_v53  ;;  %v810_v56 = vrot.slane %v790_v37, 4  ;;  %v822_v63 = vrot.slane %v801_v41, 4 }
 0x176   : > { %v766_v52 = vrot.slane %v753_v38, 4  ;;  %v769_v54 = vsel %vm620_vm2, %v753_v38, %v768_v34  ;;  %v784_v58 = vrot.slane %v765_v47, 4  ;;  %v808_v61 = vrot.slane %v796_v48, 4 }
 0x177   : > { %v777_v57 = vperm.slane %v769_v54, %v2754_v53  ;;  %v803_v59 = vsel %vm620_vm2, %v802_v49, %v729_v20  ;;  %v780_v0 = vrot.slane %v761_v50, 4  ;;  %v811_v2 = vsel %vm620_vm2, %v796_v48, %v810_v56 }
 0x178   : > { %v767_v62 = vsel %vm620_vm2, %v766_v52, %v747_v24  ;;  %v807_v1 = vperm.slane %v803_v59, %v2731_v25  ;;  %v809_v5 = vsel %vm620_vm2, %v808_v61, %v790_v37  ;;  %v819_v7 = vperm.slane %v811_v2, %v2754_v53 }
 0x179   : > { %v773_v4 = vperm.slane %v767_v62, %v2754_v53  ;;  %v782_v3 = vrot.slane %v777_v57, 4  ;;  %v785_v51 = vsel %vm620_vm2, %v777_v57, %v784_v58  ;;  %v815_v6 = vperm.slane %v809_v5, %v2754_v53 }
 0x17a   : > { %v820_v8 = vrot.slane %v807_v1, 4  ;;  %v846_v12 = vpack.c.bf16 %v785_v51, %v785_v51  ;;  %v823_v13 = vsel %vm620_vm2, %v807_v1, %v822_v63  ;;  %v838_v16 = vrot.slane %v819_v7, 4 }
 0x17b   : > { %v778_v9 = vrot.slane %v773_v4, 4  ;;  %v781_v10 = vsel %vm620_vm2, %v773_v4, %v780_v0  ;;  %v783_v11 = vsel %vm620_vm2, %v782_v3, %v765_v47  ;;  %v834_v14 = vrot.slane %v815_v6, 4 }
 0x17c   : > { %v821_v60 = vsel %vm620_vm2, %v820_v8, %v801_v41  ;;  %v831_v21 = vperm.slane %v823_v13, %v2754_v53  ;;  %v842_v17 = vpack.c.bf16 %v781_v10, %v781_v10  ;;  %855 = vst.msk [vmem:[#allocation2 + $0x18] sm:$0xf] %vm848_vm3, %v846_v12  ;;  %v1238_v22 = vperm.slane %v2807_v43, %v2731_v25 }
 0x17d   : > { %v779_v18 = vsel %vm620_vm2, %v778_v9, %v761_v50  ;;  %v827_v20 = vperm.slane %v821_v60, %v2754_v53  ;;  %v1240_v23 = vsel %vm620_vm2, %v1239_v44, %v2804_v42  ;;  %v844_v26 = vpack.c.bf16 %v783_v11, %v783_v11  ;;  %v2168_v11 = vld [vmem:[%s481_s24] ss:$0 sm:$0xff]  ;;  %s3188_s24 = sld [smem:[#allocation33_spill]] }
 0x17e   : > { %v840_v24 = vpack.c.bf16 %v779_v18, %v779_v18  ;;  %v836_v31 = vrot.slane %v831_v21, 4  ;;  %v839_v32 = vsel %vm620_vm2, %v831_v21, %v838_v16  ;;  %851 = vst.msk [vmem:[#allocation2 + $0x8] sm:$0xf] %vm848_vm3, %v842_v17  ;;  %v1223_v33 = vsel %vm620_vm2, %v2784_v19, %v2781_v15 }
 0x17f   : > { %v832_v27 = vrot.slane %v827_v20, 4  ;;  %v835_v30 = vsel %vm620_vm2, %v827_v20, %v834_v14  ;;  %v847_v35 = vpack.c.bf16 %v839_v32, %v839_v32  ;;  %853 = vst.msk [vmem:[#allocation2 + $0x10] sm:$0xf] %vm848_vm3, %v844_v26  ;;  %v1244_v44 = vperm.slane %v1240_v23, %v2731_v25  ;;  %v2148_v32 = vpop.permute.xlu0 %2147 }
 0x180   : > { %v843_v43 = vpack.c.bf16 %v835_v30, %v835_v30  ;;  %849 = vst.msk [vmem:[#allocation2] sm:$0xf] %vm848_vm3, %v840_v24  ;;  %v837_v42 = vsel %vm620_vm2, %v836_v31, %v819_v7  ;;  %v1259_v38 = vrot.slane %v1238_v22, 4  ;;  %v1227_v39 = vperm.slane %v1223_v33, %v2731_v25 }
 0x181   : > { %v833_v36 = vsel %vm620_vm2, %v832_v27, %v815_v6  ;;  %v845_v37 = vpack.c.bf16 %v837_v42, %v837_v42  ;;  %856 = vst.msk [vmem:[#allocation2 + $0x1c] sm:$0xf] %vm848_vm3, %v847_v35  ;;  %v1245_v15 = vrot.slane %v2811_v46, 4  ;;  %v1257_v19 = vrot.slane %v1244_v44, 4 }
 0x182   : > { %v841_v34 = vpack.c.bf16 %v833_v36, %v833_v36  ;;  %852 = vst.msk [vmem:[#allocation2 + $0xc] sm:$0xf] %vm848_vm3, %v843_v43  ;;  %v1260_v45 = vsel %vm620_vm2, %v1244_v44, %v1259_v38  ;;  %v1247_v48 = vrot.slane %v1227_v39, 4 }
 0x183   : > { %854 = vst.msk [vmem:[#allocation2 + $0x14] sm:$0xf] %vm848_vm3, %v845_v37  ;;  %v1246_v40 = vsel %vm620_vm2, %v1245_v15, %v1227_v39  ;;  %v1258_v41 = vsel %vm620_vm2, %v1257_v19, %v1238_v22  ;;  %v1268_v52 = vperm.slane %v1260_v45, %v2754_v53  ;;  %s1751_s23 = scalar_lea.hbm %s3188_s24, %s1995_s15  ;;  %s2393_s22 = scalar_lea.hbm %s3188_s24, 16 }
 0x184   : > { %850 = vst.msk [vmem:[#allocation2 + $0x4] sm:$0xf] %vm848_vm3, %v841_v34  ;;  %v1252_v47 = vperm.slane %v1246_v40, %v2754_v53  ;;  %v1264_v49 = vperm.slane %v1258_v41, %v2754_v53  ;;  %v1248_v62 = vsel %vm620_vm2, %v2811_v46, %v1247_v48  ;;  %s1755_s16 = sshll.u32 %s1751_s23, 4  ;;  %s1756_s16 = int_to_ptr.hbm [resolvable:$true] %s1755_s16 }
 0x185   : > { %v1273_v2 = vrot.slane %v1268_v52, 4  ;;  %v1256_v51 = vperm.slane %v1248_v62, %v2754_v53 }
 0x186   : > { %v1271_v56 = vrot.slane %v1252_v47, 4  ;;  %v1269_v0 = vrot.slane %v1264_v49, 4 }
 0x187   : > { %v1274_v6 = vsel %vm620_vm2, %v1273_v2, %v1256_v51  ;;  %v1275_v63 = vrot.slane %v1256_v51, 4 }
 0x188   : > { %v2007_v54 = vld [vmem:[#allocation2 + $0x18] sm:$0xff]  ;;  %v1272_v3 = vsel %vm620_vm2, %v1264_v49, %v1271_v56  ;;  %v1270_v5 = vsel %vm620_vm2, %v1269_v0, %v1252_v47  ;;  %v1279_v8 = vpack.c.bf16 %v1274_v6, %v1274_v6  ;;  %v2150_v56 = vunpack.i.h.bf16 %v2148_v32 }
 0x189   : > { %v2005_v50 = vld [vmem:[#allocation2 + $0x8] sm:$0xff]  ;;  %v1375_v61 = vsel %vm1298_vm4, %v2007_v54, 0  ;;  %v1278_v7 = vpack.c.bf16 %v1272_v3, %v1272_v3  ;;  %v1277_v46 = vpack.c.bf16 %v1270_v5, %v1270_v5  ;;  %v1276_v9 = vsel %vm620_vm2, %v1268_v52, %v1275_v63 }
 0x18a   : > { %v1327_v58 = vsel %vm1298_vm4, %v2005_v50, 0  ;;  %v2006_v59 = vld [vmem:[#allocation2 + $0x10] sm:$0xff]  ;;  %v1280_v10 = vpack.c.bf16 %v1276_v9, %v1276_v9  ;;  %v2149_v54 = vunpack.i.l.bf16 %v2148_v32  ;;  %v939_v62 = vrot.slane %v2150_v56, 4 }
 0x18b   : > { %v2004_v57 = vld [vmem:[#allocation2] sm:$0xff]  ;;  %1336 = vmatpush.bf16.xpose.msra.mxu3 %v1327_v58  ;;  %v1351_v4 = vsel %vm1298_vm4, %v2006_v59, 0 }
 0x18c   : > { %v1303_v1 = vsel %vm1298_vm4, %v2004_v57, 0  ;;  %1360 = vmatpush.bf16.xpose.msrb.mxu1 %v1351_v4  ;;  %v883_v59 = vrot.slane %v2149_v54, 4 }
 0x18d   : > { %1312 = vmatpush.bf16.xpose.msra.mxu2 %v1303_v1 }
 0x192   : > { %1954 = vmatmul.msk.bf16.vlgmr.msra.gmra.mxu3 %vm1298_vm4, %v1278_v7 }
 0x193   : > { %1959 = vmatmul.msk.bf16.vlgmr.msrb.gmra.mxu1 %vm1298_vm4, %v1279_v8 }
 0x194   : > { %1949 = vmatmul.msk.bf16.vlgmr.msra.gmra.mxu2 %vm1298_vm4, %v1277_v46 }
 0x195   : > { %1384 = vmatpush.bf16.xpose.msrb.mxu2 %v1375_v61 }
 0x1a4   : > { %1964 = vmatmul.msk.bf16.vlgmr.msrb.gmra.mxu2 %vm1298_vm4, %v1280_v10 }
 0x210   : > { %v1362_v12 = vpop.f32.mrf.mxu1 }
 0x211   : > { %v1363_v60 = vadd.f32 %v2168_v11, %v1362_v12 }
 0x213   : > { %v1397_v13 = vsel %vm1390_vm5, %v1363_v60, -inf }
 0x214   : > { %1398 = vmax.xlane.f32.xlu2 %v1397_v13 }
 0x215   : > { %v1338_v14 = vpop.f32.mrf.mxu3 }
 0x216   : > { %v1339_v18 = vadd.f32 %v2168_v11, %v1338_v14 }
 0x217   : > { %v1314_v16 = vpop.f32.mrf.mxu2 }
 0x218   : > { %v1315_v20 = vadd.f32 %v2168_v11, %v1314_v16  ;;  %v1364_v21 = vpop.f32.mrf.mxu1  ;;  %v1394_v22 = vsel %vm1390_vm5, %v1339_v18, -inf }
 0x21a   : > { %v1391_v17 = vsel %vm1390_vm5, %v1315_v20, -inf }
 0x21b   : > { %1392 = vmax.xlane.f32.xlu0 %v1391_v17 }
 0x21c   : > { %1395 = vmax.xlane.f32.xlu2 %v1394_v22 }
 0x21d   : > { %v1340_v23 = vpop.f32.mrf.mxu3 }
 0x21f   : > { %v1316_v24 = vpop.f32.mrf.mxu2 }
 0x227   : > { %v1386_v26 = vpop.f32.mrf.mxu2 }
 0x228   : > { %v1387_v27 = vadd.f32 %v2168_v11, %v1386_v26 }
 0x22a   : > { %v1400_v30 = vsel %vm1390_vm5, %v1387_v27, -inf }
 0x22b   : > { %1401 = vmax.xlane.f32.xlu1 %v1400_v30 }
 0x22f   : > { %v1388_v31 = vpop.f32.mrf.mxu2  ;;  %2162 = vrot.lane.b32.xlu0 %v2735_v28, %s2479_s28 }
 0x234   : > { %2157 = vrot.lane.b32.xlu2 %v2756_v55, %s2479_s28 }
 0x244   : > { %2152 = vrot.lane.b32.xlu1 %v2737_v29, %s2479_s28  ;;  %s1740_s28 = scalar_lea.sflag [#allocation6], %s2689_s19 }
 0x287   : > { %v1399_v33 = vpop.xlane.xlu2 %1398 }
 0x288   : > { %v1405_v43 = vsub.f32 %v1363_v60, %v1399_v33 }
 0x28a   : > { %v1411_v35 = vmul.f32 1.442695, %v1405_v43 }
 0x28c   : > { %2172 = vpow2.f32 %v1411_v35 }
 0x28e   : > { %v1393_v36 = vpop.xlane.xlu0 %1392 }
 0x28f   : > { %v1403_v42 = vsub.f32 %v1315_v20, %v1393_v36  ;;  %v1396_v34 = vpop.xlane.xlu2 %1395 }
 0x290   : > { %v1404_v37 = vsub.f32 %v1339_v18, %v1396_v34 }
 0x291   : > { %v1407_v44 = vmul.f32 1.442695, %v1403_v42 }
 0x292   : > { %v2930_v38 = vpop.eup %2172  ;;  %v1409_v28 = vmul.f32 1.442695, %v1404_v37 }
 0x293   : > { %2174 = vpow2.f32 %v1407_v44  ;;  %v1421_v55 = vsel %vm1390_vm5, %v2930_v38, 0.0 }
 0x294   : > { %1422 = vadd.xlane.f32.xlu2 %v1421_v55  ;;  %2176 = vpow2.f32 %v1409_v28 }
 0x297   : > { %v2158_v47 = vpop.permute.xlu2 %2157 }
 0x298   : > { %v2160_v49 = vunpack.i.h.bf16 %v2158_v47  ;;  %v2159_v50 = vunpack.i.l.bf16 %v2158_v47 }
 0x299   : > { %v2934_v39 = vpop.eup %2174 }
 0x29a   : > { %v1415_v29 = vsel %vm1390_vm5, %v2934_v39, 0.0  ;;  %v2938_v19 = vpop.eup %2176  ;;  %v937_v57 = vrot.slane %v2160_v49, 4  ;;  %v881_v58 = vrot.slane %v2159_v50, 4  ;;  %v884_v0 = vsel %vm620_vm2, %v2159_v50, %v883_v59 }
 0x29b   : > { %1416 = vadd.xlane.f32.xlu1 %v1415_v29  ;;  %v1418_v45 = vsel %vm1390_vm5, %v2938_v19, 0.0  ;;  %v940_v51 = vsel %vm620_vm2, %v2160_v49, %v939_v62  ;;  %v892_v7 = vperm.slane %v884_v0, %v2731_v25 }
 0x29c   : > { %v938_v1 = vsel %vm620_vm2, %v937_v57, %v2150_v56  ;;  %v882_v2 = vsel %vm620_vm2, %v881_v58, %v2149_v54  ;;  %v948_v11 = vperm.slane %v940_v51, %v2731_v25 }
 0x29d   : > { %v944_v5 = vperm.slane %v938_v1, %v2731_v25  ;;  %v888_v6 = vperm.slane %v882_v2, %v2731_v25  ;;  %v919_v17 = vrot.slane %v892_v7, 4 }
 0x29e   : > { %v1402_v15 = vpop.xlane.xlu1 %1401  ;;  %v975_v31 = vrot.slane %v948_v11, 4 }
 0x29f   : > { %v1406_v40 = vsub.f32 %v1387_v27, %v1402_v15  ;;  %v907_v16 = vrot.slane %v888_v6, 4  ;;  %v963_v21 = vrot.slane %v944_v5, 4 }
 0x2a1   : > { %v1413_v41 = vmul.f32 1.442695, %v1406_v40  ;;  %v2163_v61 = vpop.permute.xlu0 %2162 }
 0x2a2   : > { %v2165_v4 = vunpack.i.h.bf16 %v2163_v61  ;;  %v2164_v3 = vunpack.i.l.bf16 %v2163_v61 }
 0x2a3   : > { %1419 = vadd.xlane.f32.xlu1 %v1418_v45  ;;  %2178 = vpow2.f32 %v1413_v41 }
 0x2a4   : > { %v949_v8 = vrot.slane %v2165_v4, 4  ;;  %v893_v63 = vrot.slane %v2164_v3, 4 }
 0x2a9   : > { %v2942_v48 = vpop.eup %2178 }
 0x2aa   : > { %v1424_v52 = vsel %vm1390_vm5, %v2942_v48, 0.0 }
 0x2ab   : > { %1425 = vadd.xlane.f32.xlu0 %v1424_v52 }
 0x2b6   : > { %v2153_v46 = vpop.permute.xlu1 %2152 }
 0x2b7   : > { %v2155_v9 = vunpack.i.h.bf16 %v2153_v46  ;;  %v2154_v10 = vunpack.i.l.bf16 %v2153_v46 }
 0x2b9   : > { %v951_v12 = vrot.slane %v2155_v9, 4  ;;  %v894_v60 = vsel %vm620_vm2, %v893_v63, %v2154_v10  ;;  %v895_v13 = vrot.slane %v2154_v10, 4  ;;  %v950_v14 = vsel %vm620_vm2, %v949_v8, %v2155_v9 }
 0x2ba   : > { %v900_v18 = vperm.slane %v894_v60, %v2731_v25  ;;  %v956_v20 = vperm.slane %v950_v14, %v2731_v25 }
 0x2bb   : > { %v896_v22 = vsel %vm620_vm2, %v2164_v3, %v895_v13  ;;  %v952_v23 = vsel %vm620_vm2, %v2165_v4, %v951_v12 }
 0x2bc   : > { %v904_v24 = vperm.slane %v896_v22, %v2731_v25  ;;  %v905_v26 = vrot.slane %v900_v18, 4  ;;  %v908_v27 = vsel %vm620_vm2, %v900_v18, %v907_v16  ;;  %v960_v30 = vperm.slane %v952_v23, %v2731_v25 }
 0x2bd   : > { %v916_v32 = vperm.slane %v908_v27, %v2754_v53  ;;  %v961_v33 = vrot.slane %v956_v20, 4  ;;  %v964_v43 = vsel %vm620_vm2, %v956_v20, %v963_v21 }
 0x2be   : > { %v906_v35 = vsel %vm620_vm2, %v905_v26, %v888_v6  ;;  %v917_v36 = vrot.slane %v904_v24, 4  ;;  %v920_v42 = vsel %vm620_vm2, %v904_v24, %v919_v17  ;;  %v972_v44 = vperm.slane %v964_v43, %v2754_v53 }
 0x2bf   : > { %v912_v34 = vperm.slane %v906_v35, %v2754_v53  ;;  %v928_v37 = vperm.slane %v920_v42, %v2754_v53  ;;  %v931_v28 = vrot.slane %v916_v32, 4  ;;  %v962_v55 = vsel %vm620_vm2, %v961_v33, %v944_v5 }
 0x2c0   : > { %v918_v29 = vsel %vm620_vm2, %v917_v36, %v892_v7  ;;  %v968_v15 = vperm.slane %v962_v55, %v2754_v53  ;;  %v973_v40 = vrot.slane %v960_v30, 4  ;;  %v976_v41 = vsel %vm620_vm2, %v960_v30, %v975_v31 }
 0x2c1   : > { %v924_v45 = vperm.slane %v918_v29, %v2754_v53  ;;  %v929_v47 = vrot.slane %v912_v34, 4  ;;  %v932_v49 = vsel %vm620_vm2, 0.0, %v931_v28  ;;  %v935_v50 = vrot.slane %v928_v37, 4 }
 0x2c2   : > { %v974_v52 = vsel %vm620_vm2, %v973_v40, %v948_v11  ;;  %v984_v54 = vperm.slane %v976_v41, %v2754_v53  ;;  %v985_v56 = vrot.slane %v968_v15, 4  ;;  %v987_v57 = vrot.slane %v972_v44, 4 }
 0x2c3   : > { %v930_v58 = vsel %vm620_vm2, 0.0, %v929_v47  ;;  %v933_v59 = vrot.slane %v924_v45, 4  ;;  %v936_v61 = vsel %vm620_vm2, 0.0, %v935_v50  ;;  %v980_v62 = vperm.slane %v974_v52, %v2754_v53 }
 0x2c4   : > { %v986_v0 = vsel %vm620_vm2, 0.0, %v985_v56  ;;  %v988_v1 = vsel %vm620_vm2, 0.0, %v987_v57  ;;  %v991_v2 = vrot.slane %v984_v54, 4  ;;  %v993_v4 = vsel %vm620_vm2, %v931_v28, %v912_v34 }
 0x2c5   : > { %v934_v3 = vsel %vm620_vm2, 0.0, %v933_v59  ;;  %v989_v51 = vrot.slane %v980_v62, 4  ;;  %v997_v5 = vperm.slane %v993_v4, %v2731_v25  ;;  %v998_v6 = vrot.slane %v932_v49, 4 }
 0x2c6   : > { %v992_v7 = vsel %vm620_vm2, 0.0, %v991_v2  ;;  %v1004_v46 = vsel %vm620_vm2, %v935_v50, %v924_v45  ;;  %v1009_v8 = vrot.slane %v936_v61, 4  ;;  %v1047_v63 = vsel %vm620_vm2, %v987_v57, %v968_v15 }
 0x2c7   : > { %v990_v9 = vsel %vm620_vm2, 0.0, %v989_v51  ;;  %v999_v10 = vsel %vm620_vm2, %v998_v6, %v930_v58  ;;  %v1008_v11 = vperm.slane %v1004_v46, %v2731_v25  ;;  %v1017_v12 = vrot.slane %v997_v5, 4 }
 0x2c8   : > { %v1003_v60 = vperm.slane %v999_v10, %v2731_v25  ;;  %v1010_v13 = vsel %vm620_vm2, %v1009_v8, %v934_v3  ;;  %v1051_v14 = vperm.slane %v1047_v63, %v2731_v25  ;;  %v1052_v16 = vrot.slane %v988_v1, 4 }
 0x2c9   : > { %v1014_v18 = vperm.slane %v1010_v13, %v2731_v25  ;;  %v1029_v20 = vrot.slane %v1008_v11, 4  ;;  %v1058_v21 = vsel %vm620_vm2, %v991_v2, %v980_v62  ;;  %v1063_v17 = vrot.slane %v992_v7, 4 }
 0x2ca   : > { %v1015_v22 = vrot.slane %v1003_v60, 4  ;;  %v1018_v23 = vsel %vm620_vm2, %v1003_v60, %v1017_v12  ;;  %v1053_v24 = vsel %vm620_vm2, %v1052_v16, %v986_v0  ;;  %v1062_v26 = vperm.slane %v1058_v21, %v2731_v25 }
 0x2cb   : > { %v1026_v27 = vperm.slane %v1018_v23, %v2754_v53  ;;  %v1027_v30 = vrot.slane %v1014_v18, 4  ;;  %v1030_v31 = vsel %vm620_vm2, %v1014_v18, %v1029_v20  ;;  %v1057_v32 = vperm.slane %v1053_v24, %v2731_v25 }
 0x2cc   : > { %v1016_v33 = vsel %vm620_vm2, %v1015_v22, %v997_v5  ;;  %v1038_v43 = vperm.slane %v1030_v31, %v2754_v53  ;;  %v1064_v35 = vsel %vm620_vm2, %v1063_v17, %v990_v9  ;;  %v1071_v36 = vrot.slane %v1051_v14, 4 }
 0x2cd   : > { %v1022_v42 = vperm.slane %v1016_v33, %v2754_v53  ;;  %v1028_v44 = vsel %vm620_vm2, %v1027_v30, %v1008_v11  ;;  %v1045_v34 = vrot.slane %v1026_v27, 4  ;;  %v1068_v37 = vperm.slane %v1064_v35, %v2731_v25 }
 0x2ce   : > { %v1034_v28 = vperm.slane %v1028_v44, %v2754_v53  ;;  %v1043_v55 = vrot.slane %v1038_v43, 4  ;;  %v1069_v29 = vrot.slane %v1057_v32, 4  ;;  %v1072_v15 = vsel %vm620_vm2, %v1057_v32, %v1071_v36 }
 0x2cf   : > { %v1041_v40 = vrot.slane %v1022_v42, 4  ;;  %v1046_v41 = vsel %vm620_vm2, %v1038_v43, %v1045_v34  ;;  %v1080_v45 = vperm.slane %v1072_v15, %v2754_v53  ;;  %v1081_v47 = vrot.slane %v1068_v37, 4 }
 0x2d0   : > { %v1039_v49 = vrot.slane %v1034_v28, 4  ;;  %v1044_v50 = vsel %vm620_vm2, %v1043_v55, %v1026_v27  ;;  %v1070_v52 = vsel %vm620_vm2, %v1069_v29, %v1051_v14  ;;  %v1083_v54 = vrot.slane %v1062_v26, 4 }
 0x2d1   : > { %v1042_v56 = vsel %vm620_vm2, %v1034_v28, %v1041_v40  ;;  %v1076_v57 = vperm.slane %v1070_v52, %v2754_v53  ;;  %v1082_v58 = vsel %vm620_vm2, %v1081_v47, %v1062_v26  ;;  %v1099_v59 = vrot.slane %v1080_v45, 4 }
 0x2d2   : > { %v1040_v61 = vsel %vm620_vm2, %v1039_v49, %v1022_v42  ;;  %v1084_v62 = vsel %vm620_vm2, %v1068_v37, %v1083_v54  ;;  %v1088_v0 = vperm.slane %v1082_v58, %v2754_v53  ;;  %v1103_v1 = vpack.c.bf16 %v1042_v56, %v1042_v56 }
 0x2d3   : > { %v1092_v2 = vperm.slane %v1084_v62, %v2754_v53  ;;  %v1095_v4 = vrot.slane %v1076_v57, 4  ;;  %v1101_v3 = vpack.c.bf16 %v1040_v61, %v1040_v61  ;;  %v1105_v51 = vpack.c.bf16 %v1044_v50, %v1044_v50 }
 0x2d4   : > { %v1093_v5 = vrot.slane %v1088_v0, 4  ;;  %v1107_v6 = vpack.c.bf16 %v1046_v41, %v1046_v41  ;;  %1111 = vst.msk [vmem:[#allocation3 + $0x8] sm:$0xf] %vm848_vm3, %v1103_v1 }
 0x2d5   : > { %v1096_v7 = vsel %vm620_vm2, %v1088_v0, %v1095_v4  ;;  %v1097_v46 = vrot.slane %v1092_v2, 4  ;;  %v1100_v8 = vsel %vm620_vm2, %v1092_v2, %v1099_v59  ;;  %1109 = vst.msk [vmem:[#allocation3] sm:$0xf] %vm848_vm3, %v1101_v3 }
 0x2d6   : > { %v1094_v63 = vsel %vm620_vm2, %v1093_v5, %v1076_v57  ;;  %v1108_v9 = vpack.c.bf16 %v1100_v8, %v1100_v8  ;;  %1113 = vst.msk [vmem:[#allocation3 + $0x10] sm:$0xf] %vm848_vm3, %v1105_v51  ;;  %v1104_v12 = vpack.c.bf16 %v1096_v7, %v1096_v7 }
 0x2d7   : > { %v1098_v10 = vsel %vm620_vm2, %v1097_v46, %v1080_v45  ;;  %v1102_v11 = vpack.c.bf16 %v1094_v63, %v1094_v63  ;;  %1115 = vst.msk [vmem:[#allocation3 + $0x18] sm:$0xf] %vm848_vm3, %v1107_v6 }
 0x2d8   : > { %v1106_v60 = vpack.c.bf16 %v1098_v10, %v1098_v10  ;;  %1116 = vst.msk [vmem:[#allocation3 + $0x1c] sm:$0xf] %vm848_vm3, %v1108_v9 }
 0x2d9   : > { %1110 = vst.msk [vmem:[#allocation3 + $0x4] sm:$0xf] %vm848_vm3, %v1102_v11 }
 0x2da   : > { %1114 = vst.msk [vmem:[#allocation3 + $0x14] sm:$0xf] %vm848_vm3, %v1106_v60 }
 0x2db   : > { %1112 = vst.msk [vmem:[#allocation3 + $0xc] sm:$0xf] %vm848_vm3, %v1104_v12 }
 0x2df   : > { %v2011_v13 = vld [vmem:[#allocation3 + $0x18] sm:$0xff] }
 0x2e0   : > { %v2008_v14 = vld [vmem:[#allocation3] sm:$0xff]  ;;  %1529 = vmatpush.bf16.msra.mxu2 %v2011_v13 }
 0x2e1   : > { %v2010_v16 = vld [vmem:[#allocation3 + $0x10] sm:$0xff]  ;;  %1463 = vmatpush.bf16.msrb.mxu3 %v2008_v14 }
 0x2e2   : > { %v2009_v18 = vld [vmem:[#allocation3 + $0x8] sm:$0xff]  ;;  %1507 = vmatpush.bf16.msra.mxu1 %v2010_v16 }
 0x2e3   : > { %1485 = vmatpush.bf16.msrb.mxu0 %v2009_v18 }
 0x307   : > { %v1423_v20 = vpop.xlane.xlu2 %1422 }
 0x308   : > { %2180 = vrcp.f32 %v1423_v20 }
 0x30e   : > { %v1417_v21 = vpop.xlane.xlu1 %1416  ;;  %v2181_v17 = vpop.eup %2180 }
 0x30f   : > { %2182 = vrcp.f32 %v1417_v21  ;;  %v1433_v22 = vmul.f32 %v2181_v17, %v2930_v38 }
 0x311   : > { %v1437_v23 = vpack.c.bf16 %v1433_v22, %v1433_v22 }
 0x313   : > { %1979 = vmatmul.msk.bf16.vlgmr.msra.gmra.mxu1 %vm1390_vm5, %v1437_v23 }
 0x315   : > { %v2183_v24 = vpop.eup %2182 }
 0x316   : > { %v1431_v26 = vmul.f32 %v2183_v24, %v2934_v39  ;;  %v1420_v27 = vpop.xlane.xlu1 %1419 }
 0x317   : > { %2184 = vrcp.f32 %v1420_v27 }
 0x318   : > { %v1435_v30 = vpack.c.bf16 %v1431_v26, %v1431_v26 }
 0x31a   : > { %1969 = vmatmul.msk.bf16.vlgmr.msrb.gmra.mxu3 %vm1390_vm5, %v1435_v30 }
 0x31d   : > { %v2185_v31 = vpop.eup %2184 }
 0x31e   : > { %v1432_v32 = vmul.f32 %v2185_v31, %v2938_v19  ;;  %v1426_v33 = vpop.xlane.xlu0 %1425 }
 0x31f   : > { %2186 = vrcp.f32 %v1426_v33 }
 0x320   : > { %v1436_v43 = vpack.c.bf16 %v1432_v32, %v1432_v32 }
 0x322   : > { %1974 = vmatmul.msk.bf16.vlgmr.msrb.gmra.mxu0 %vm1390_vm5, %v1436_v43 }
 0x325   : > { %v2187_v38 = vpop.eup %2186 }
 0x326   : > { %v1434_v35 = vmul.f32 %v2187_v38, %v2942_v48 }
 0x328   : > { %v1438_v36 = vpack.c.bf16 %v1434_v35, %v1434_v35 }
 0x32a   : > { %1984 = vmatmul.msk.bf16.vlgmr.msra.gmra.mxu2 %vm1390_vm5, %v1438_v36 }
 0x390   : > { %v1509_v39 = vpop.f32.mrf.mxu1 }
 0x391   : > { %v1535_v29 = vrot.slane %v1509_v39, 4 }
 0x398   : > { %v1511_v42 = vpop.f32.mrf.mxu1 }
 0x39d   : > { %v1465_v44 = vpop.f32.mrf.mxu3 }
 0x39e   : > { %v1537_v37 = vrot.slane %v1465_v44, 4  ;;  %v1536_v15 = vsel %vm620_vm2, %v1535_v29, %v1465_v44  ;;  %v2013_v29 = vld [vmem:[#allocation13 + $0x8] sm:$0xff] }
 0x39f   : > { %v1487_v34 = vpop.f32.mrf.mxu0  ;;  %v1542_v48 = vperm.slane %v1536_v15, %v2731_v25  ;;  %1691 = vmatpush.bf16.msra.mxu3 %v2013_v29 }
 0x3a0   : > { %v1538_v19 = vsel %vm620_vm2, %v1509_v39, %v1537_v37  ;;  %v1549_v41 = vrot.slane %v1487_v34, 4 }
 0x3a1   : > { %v1546_v40 = vperm.slane %v1538_v19, %v2731_v25  ;;  %v1561_v56 = vrot.slane %v1542_v48, 4  ;;  %v2012_v19 = vld [vmem:[#allocation13] sm:$0xff] }
 0x3a3   : > { %v1573_v50 = vrot.slane %v1546_v40, 4  ;;  %1692 = vmatpush.bf16.msra.mxu3 %v2012_v19 }
 0x3a5   : > { %v1467_v28 = vpop.f32.mrf.mxu3 }
 0x3a7   : > { %v1489_v55 = vpop.f32.mrf.mxu0 }
 0x3ad   : > { %v1531_v45 = vpop.f32.mrf.mxu2 }
 0x3ae   : > { %v1547_v47 = vrot.slane %v1531_v45, 4  ;;  %v1550_v49 = vsel %vm620_vm2, %v1531_v45, %v1549_v41 }
 0x3af   : > { %v1558_v52 = vperm.slane %v1550_v49, %v2731_v25  ;;  %v2169_v49 = vld [vmem:[%s3146_s8] ss:$0 sm:$0xff] }
 0x3b0   : > { %v1548_v54 = vsel %vm620_vm2, %v1547_v47, %v1487_v34 }
 0x3b1   : > { %v1554_v57 = vperm.slane %v1548_v54, %v2731_v25  ;;  %v1571_v58 = vrot.slane %v1558_v52, 4  ;;  %v1574_v59 = vsel %vm620_vm2, %v1558_v52, %v1573_v50  ;;  %v2192_v54 = vld [vmem:[%s2695_s3] sm:$0xff] }
 0x3b2   : > { %v1582_v61 = vperm.slane %v1574_v59, %v2754_v53  ;;  %v2485_v59 = vmov 32.0  }
 0x3b3   : > { %v1559_v62 = vrot.slane %v1554_v57, 4  ;;  %v1562_v0 = vsel %vm620_vm2, %v1554_v57, %v1561_v56  ;;  %v1572_v1 = vsel %vm620_vm2, %v1571_v58, %v1546_v40  ;;  %2188 = vrcp.f32 %v2485_v59 }
 0x3b4   : > { %v1570_v2 = vperm.slane %v1562_v0, %v2754_v53  ;;  %v1578_v4 = vperm.slane %v1572_v1, %v2754_v53  ;;  %v1589_v3 = vrot.slane %v1582_v61, 4 }
 0x3b5   : > { %v1560_v51 = vsel %vm620_vm2, %v1559_v62, %v1542_v48  ;;  %v1533_v5 = vpop.f32.mrf.mxu2 }
 0x3b6   : > { %v1566_v6 = vperm.slane %v1560_v51, %v2754_v53  ;;  %v1585_v7 = vrot.slane %v1570_v2, 4  ;;  %v1587_v46 = vrot.slane %v1578_v4, 4  ;;  %v1590_v8 = vsel %vm620_vm2, 0.0, %v1589_v3 }
 0x3b7   : > { %v1602_v63 = vsel %vm620_vm2, %v1589_v3, %v1578_v4  ;;  %v1607_v9 = vrot.slane %v1590_v8, 4 }
 0x3b8   : > { %v1583_v10 = vrot.slane %v1566_v6, 4  ;;  %v1586_v11 = vsel %vm620_vm2, 0.0, %v1585_v7  ;;  %v1588_v12 = vsel %vm620_vm2, 0.0, %v1587_v46  ;;  %v1606_v60 = vperm.slane %v1602_v63, %v2731_v25 }
 0x3b9   : > { %v1596_v13 = vrot.slane %v1586_v11, 4  ;;  %v1591_v14 = vsel %vm620_vm2, %v1585_v7, %v1566_v6  ;;  %v1608_v16 = vsel %vm620_vm2, %v1607_v9, %v1588_v12  ;;  %v2189_v61 = vpop.eup %2188 }
 0x3ba   : > { %v1584_v18 = vsel %vm620_vm2, 0.0, %v1583_v10  ;;  %v1595_v20 = vperm.slane %v1591_v14, %v2731_v25  ;;  %v1612_v21 = vperm.slane %v1608_v16, %v2731_v25  ;;  %v1627_v17 = vrot.slane %v1606_v60, 4  ;;  %v2170_v14 = vld [vmem:[%s3187_s9] ss:$0 sm:$0xff] }
 0x3bb   : > { %v1597_v22 = vsel %vm620_vm2, %v1596_v13, %v1584_v18  ;;  %v1703_v62 = vmul.f32 32.0, %v2189_v61  ;;  %vm1707_vm7 = vweird.f32 %v2189_v61 }
 0x3bc   : > { %v1601_v23 = vperm.slane %v1597_v22, %v2731_v25  ;;  %v1615_v24 = vrot.slane %v1595_v20, 4  ;;  %v1628_v26 = vsel %vm620_vm2, %v1612_v21, %v1627_v17  ;;  %v1625_v27 = vrot.slane %v1612_v21, 4 }
 0x3bd   : > { %v1636_v30 = vperm.slane %v1628_v26, %v2754_v53  ;;  %v1704_v0 = vsub.f32 1.0, %v1703_v62 }
 0x3be   : > { %v1616_v31 = vsel %vm620_vm2, %v1601_v23, %v1615_v24  ;;  %v1613_v32 = vrot.slane %v1601_v23, 4  ;;  %v1626_v33 = vsel %vm620_vm2, %v1625_v27, %v1606_v60 }
 0x3bf   : > { %v1624_v43 = vperm.slane %v1616_v31, %v2754_v53  ;;  %v1641_v38 = vrot.slane %v1636_v30, 4  ;;  %v1632_v35 = vperm.slane %v1626_v33, %v2754_v53  ;;  %v1705_v1 = vmul.f32 %v2189_v61, %v1704_v0 }
 0x3c0   : > { %v1614_v36 = vsel %vm620_vm2, %v1613_v32, %v1595_v20  ;;  %v2171_v20 = vld [vmem:[%s3190_s10] ss:$0 sm:$0xff] }
 0x3c1   : > { %v1642_v25 = vsel %vm620_vm2, %v1641_v38, %v1624_v43  ;;  %v1643_v39 = vrot.slane %v1624_v43, 4  ;;  %v1620_v42 = vperm.slane %v1614_v36, %v2754_v53  ;;  %v1637_v44 = vrot.slane %v1632_v35, 4 }
 0x3c2   : > { %1650 = vrot.lane.b32.xlu2 %v1642_v25, %s2482_s14  ;;  %v1706_v2 = vadd.f32 %v2189_v61, %v1705_v1  ;;  %s2387_s14 = sshra.s32 %s1756_s16, 4  ;;  %s2388_s14 = int_to_ptr.hbm [resolvable:$true] %s2387_s14 }
 0x3c3   : > { %v1644_v34 = vsel %vm620_vm2, %v1636_v30, %v1643_v39  ;;  %v1639_v37 = vrot.slane %v1620_v42, 4  ;;  %v1638_v28 = vsel %vm620_vm2, %v1637_v44, %v1620_v42  ;;  %p2394_p8 = scmp.lt.s32.totalorder %s2388_s14, %s3188_s24 }
 0x3c4   : > { %1654 = vrot.lane.b32.xlu1 %v1644_v34, %s2483_s11  ;;  %v1708_v4 = vsel %vm1707_vm7, %v2189_v61, %v1706_v2  ;;  %s2389_s11 = scalar_lea.hbm %s2388_s14, 8 }
 0x3c5   : > { %v1640_v55 = vsel %vm620_vm2, %v1632_v35, %v1639_v37  ;;  %p2390_p1 = scmp.ne.s32.totalorder %s2388_s14, %s2389_s11  ;;  %p2395_p10 = scmp.lt.s32.totalorder %s2393_s22, %s2389_s11 }
 0x3c6   : > { %1646 = vrot.lane.b32.xlu0 %v1640_v55, %s2484_s1 }
 0x3c7   : > { %p2391_p2 = pnand %p2390_p1, %p2626_p5  ;;  %p2396_p11 = por %p2395_p10, %p2394_p8 }
 0x3c9   : > { %p2392_p4 = pneg %p2391_p2 }
 0x3cb   : > { %p2397_p12 = pnand %p2396_p11, %p2392_p4 }
 0x41c   : > { %v1651_v15 = vpop.permute.xlu2 %1650 }
 0x436   : > { %v1655_v41 = vpop.permute.xlu1 %1654 }
 0x438   : > { %v1647_v53 = vpop.permute.xlu0 %1646 }
 0x439   : > { %v1657_v40 = vsel %vm1298_vm4, %v1638_v28, %v1647_v53 }
 0x43a   : > { %v1658_v48 = vsel %vm1390_vm5, %v1657_v40, %v1651_v15 }
 0x43b   : > { %v1660_v45 = vsel %vm1659_vm6, %v1658_v48, %v1655_v41 }
 0x43c   : > { %v1661_v47 = vpack.c.bf16 %v1660_v45, %v1660_v45 }
 0x43e   : > { %1993 = vmatmul.msk.bf16.vlgmr.msra.gmra.mxu3 %vm1139_vm0, %v1661_v47 }
 0x4c1   : > { %v1694_v50 = vpop.f32.mrf.mxu3 }
 0x4c2   : > { %v1695_v52 = vadd.f32 %v2169_v49, %v1694_v50 }
 0x4c4   : > { %v1698_v56 = vadd.f32 %v2192_v54, %v1695_v52 }
 0x4c6   : > { %v1699_v57 = vsel %vm1139_vm0, %v1698_v56, 0.0 }
 0x4c7   : > { %1700 = vadd.xlane.f32.xlu0 %v1699_v57 }
 0x4c9   : > { %v1696_v58 = vpop.f32.mrf.mxu3 }
 0x53a   : > { %v1701_v3 = vpop.xlane.xlu0 %1700 }
 0x53b   : > { %v1709_v51 = vmul.f32 %v1708_v4, %v1701_v3 }
 0x53d   : > { %v1710_v5 = vsub.f32 %v1698_v56, %v1709_v51 }
 0x53f   : > { %v1711_v6 = vmul.f32 %v1710_v5, %v1710_v5 }
 0x541   : > { %v1712_v7 = vsel %vm1139_vm0, %v1711_v6, 0.0 }
 0x542   : > { %1713 = vadd.xlane.f32.xlu2 %v1712_v7 }
 0x5b5   : > { %v1714_v46 = vpop.xlane.xlu2 %1713 }
 0x5b6   : > { %v1715_v8 = vmul.f32 %v1714_v46, %v1708_v4 }
 0x5b8   : > { %v1716_v63 = vadd.f32 1e-12, %v1715_v8 }
 0x5ba   : > { %2190 = vrsqrt.f32 %v1716_v63  ;;  %vm1723_vm9 = vweird.f32 %v1716_v63 }
 0x5c0   : > { %v2191_v9 = vpop.eup %2190 }
 0x5c1   : > { %v1718_v10 = vmul.f32 %v2191_v9, %v1716_v63  ;;  %vm1724_vm8 = vweird.f32 %v2191_v9 }
 0x5c2   : > { %vm1725_vm10 = vmor %vm1723_vm9, %vm1724_vm8 }
 0x5c3   : > { %v1719_v11 = vmul.f32 %v2191_v9, %v1718_v10 }
 0x5c5   : > { %v1720_v12 = vmul.f32 0.5, %v1719_v11 }
 0x5c7   : > { %v1721_v60 = vsub.f32 1.5, %v1720_v12 }
 0x5c9   : > { %v1722_v13 = vmul.f32 %v2191_v9, %v1721_v60 }
 0x5cb   : > { %v1726_v16 = vsel %vm1725_vm10, %v2191_v9, %v1722_v13 }
 0x5cc   : > { %v1727_v18 = vmul.f32 %v1726_v16, %v1710_v5 }
 0x5ce   : > { %v1732_v21 = vmul.f32 %v2170_v14, %v1727_v18 }
 0x5d0   : > { %v1737_v17 = vadd.f32 %v2171_v20, %v1732_v21 }
 0x5d2   : > { %1738 = vst.msk [vmem:[%s544_s20] sm:$0xff] %vm1139_vm0, %v1737_v17 }
 0x5d3   : > { %2400 = shalt.err (!%p2397_p12)
}
 0x5d4   : > { %2032 = dma.vmem_to_hbm [thread:$0]  (%p2626_p5), %s1754_s26, 128, %s1756_s16, %s1740_s28  }
 0x5d5 PF: > { %s3191_s19 = sld [smem:[#allocation21_spill]] }
 0x5d6   : > { %s3193_s5 = sld [smem:[#allocation23_spill]] }
 0x5db   : > { %s1767_s9 = sand.u32 1, %s3191_s19  }
 0x5dc   : > { %p3194_p13 = scmp.ge.s32.totalorder %s3193_s5, 2  ;;  %s1768_s30 = scalar_lea.sflag [#allocation6], %s1767_s9 }
 0x5de   : > { %p2055_p0 = pnand %p3194_p13, %p2591_p6 }
 0x5e0   : > { %p2056_p3 = pneg %p2055_p0 }
 0x5e2   : > { %2442 = dma.done.wait (%p2056_p3), %s1768_s30, 128  }
 0x5e3   : > { %2444 = vsyncadd (%p2056_p3), %s1768_s30, 4294967168  ;;  %s32_s22 = sadd.s32 1, %s3193_s5   ;;  %s3195_s29 = sld [smem:[#allocation22_spill]] }
 0x5e4   : > { %p29_p7 = scmp.ge.s32.totalorder %s32_s22, 4   ;;  %s3196_s19 = sld [smem:[#allocation27_spill]] }
 0x5e5   : > { %s3197_s23 = sld [smem:[#allocation25_spill]]  ;;  %s3198_s17 = smov %s2451_s18 }
 0x5e6   : > { %s3200_s20 = smov %s2463_s21 }
 0x5e7   :  { %31 = sbr.rel (!%p29_p7) target bundleno = 17 (0x11), region = 149 }
 0x5e9   : > { %s3199_s18 = smov %s3195_s29 }
 0x5eb   : > { %s3201_s21 = smov %s3197_s23 }
 0x5ec   :  { %1774 = vsyncpa [#allocation5], 1 }
 0x5ed   :  { %1776 = vsyncpa [#allocation5 + $0x1], 1 }
 0x5ee   :  { %1777 = vsyncpa [#allocation8], 1 }
 0x5ef   :  { %1779 = vsyncpa [#allocation8 + $0x1], 1 }
 0x5f0   :  { %1780 = vsyncpa [#allocation11], 1 }
 0x5f1   :  { %1781 = vsyncpa [#allocation14], 1 }
 0x5f2   :  { %1782 = vsyncpa [#allocation6], 1 }
 0x5f3   :  { %1784 = vsyncpa [#allocation6 + $0x1], 1 }

</bundles_post_ra>
